<compile_context>
chip_gen: v7x
topology: tpu7x:2x2x1
jax: 0.10.0
libtpu: 0.0.40
codegen_flags: <defaults>
</compile_context>

<pallas_src>
import jax
import jax.numpy as jnp
import numpy as np
from jax.experimental import pallas as pl
from jax.experimental.pallas import tpu as pltpu

HIDDEN = 256                      # module default hidden_size
ENC_OUT = 32                      # each context encoder Linear(1, 32)
N_CTX = 5                         # five context keys
CTX_DIM = N_CTX * ENC_OUT         # 160 = GRU input size
CTX_PAD = 8                       # padded sublane dim of the folded weight
STYLE_OUT = 64
N_STYLES = 4
STYLE_DIM = N_STYLES * STYLE_OUT  # 256
OUT_DIM = HIDDEN + STYLE_DIM      # 512 merged output (h | s)

CTX_KEYS = ["user_age", "user_language_level", "urgency",
            "time_of_day", "previous_interactions"]
STYLE_KEYS = ["formality", "detail_level", "empathy", "simplicity"]


# ------------------------------ Pallas kernel --------------------------------
def adapter_kernel(ctx_ref, w_fold_ref, b_fold_ref, b_hn_ref,
                   w_sty_ref, b_sty_ref, out_ref):
    H = HIDDEN

    # --- folded context encoders + GRU input weight: 5 scalar-broadcast FMAs -
    # (ctx is in SMEM; no MXU involvement for this tiny K=5, M=1 contraction.)
    gi = b_fold_ref[...]                                        # (1, 768) f32
    for k in range(N_CTX):                                      # static unroll
        gi = gi + ctx_ref[k] * w_fold_ref[pl.ds(k, 1), :]       # VPU FMA

    # --- GRUCell(160, 256) with h0 == 0, PyTorch gate order [r, z, n] --------
    # (128-aligned lane slices: 0 / 256 / 512 — keep if HIDDEN ever changes.)
    r = jax.nn.sigmoid(gi[:, 0:H])                 # hidden-side r-pre == b_hr (folded)
    z = jax.nn.sigmoid(gi[:, H:2 * H])             # hidden-side z-pre == b_hz (folded)
    n = jnp.tanh(gi[:, 2 * H:3 * H] + r * b_hn_ref[...])
    h = (1.0 - z) * n                              # z * h0 == 0
    out_ref[:, 0:H] = h                            # lanes 0..255

    # --- style modifiers: s = sigmoid(h @ W_s + b_s), (1, 256) ---------------
    s = jax.nn.sigmoid(
        jnp.dot(h, w_sty_ref[...],
                preferred_element_type=jnp.float32,
                precision=jax.lax.Precision.HIGHEST)
        + b_sty_ref[...])
    out_ref[:, H:H + STYLE_DIM] = s                # lanes 256..511 (128-aligned)
    # Per-style mean-of-64 is done on the host (already doing a device_get).


def _vmem_spec():
    return pl.BlockSpec(memory_space=pltpu.MemorySpace.VMEM)


@jax.jit
def run_adapter_kernel(ctx, params):
    inputs = (ctx,
              params["w_fold"], params["b_fold"], params["b_hn"],
              params["w_sty"], params["b_sty"])
    return pl.pallas_call(
        adapter_kernel,
        out_shape=jax.ShapeDtypeStruct((1, OUT_DIM), jnp.float32),
        in_specs=[pl.BlockSpec(memory_space=pltpu.MemorySpace.SMEM)]  # ctx scalars
                 + [_vmem_spec() for _ in range(len(inputs) - 1)],
        out_specs=_vmem_spec(),
    )(*inputs)


# ------------------------- host-side parameter setup -------------------------
def init_params(key, hidden_size=HIDDEN):
    """Synthetic weights matching the PyTorch module, then algebraically folded."""
    ks = list(jax.random.split(key, 7))

    def unif(k, shape, fan_in):
        bound = 1.0 / jnp.sqrt(jnp.float32(fan_in))
        return jax.random.uniform(k, shape, jnp.float32, -bound, bound)

    # 5x Linear(1, 32): weight columns concatenated -> (160,)
    w_enc = unif(ks[0], (CTX_DIM,), 1)
    b_enc = unif(ks[1], (CTX_DIM,), 1)

    # GRUCell(160, 256): weight_ih stored transposed (160, 768); biases (768,).
    # weight_hh is mathematically dead (h0 == 0) and never materialized.
    w_ih = unif(ks[2], (CTX_DIM, 3 * hidden_size), hidden_size)
    b_ih = unif(ks[3], (3 * hidden_size,), hidden_size)
    b_hh = unif(ks[4], (3 * hidden_size,), hidden_size)

    # 4x Linear(256, 64): transposed + concatenated -> (256, 256)
    w_sty = unif(ks[5], (hidden_size, STYLE_DIM), hidden_size)
    b_sty = unif(ks[6], (STYLE_DIM,), hidden_size)

    # ---- fold the context encoders into the GRU input weight (host, once) ---
    # x[j] = c_{j//32} * w_enc[j] + b_enc[j];  gi = x @ W_ih + b_ih
    w_scaled = w_enc[:, None] * w_ih                                   # (160,768)
    w_fold5 = w_scaled.reshape(N_CTX, ENC_OUT, 3 * hidden_size).sum(axis=1)
    w_fold = jnp.pad(w_fold5, ((0, CTX_PAD - N_CTX), (0, 0)))          # (8,768)
    b_fold = b_enc @ w_ih + b_ih                                       # (768,)
    # h0 == 0 -> hidden-side gate preactivation is just b_hh.  Fold the r/z
    # chunks into the input bias; keep the n-chunk (gated by r) separate.
    b_fold = b_fold.at[:2 * hidden_size].add(b_hh[:2 * hidden_size])
    b_hn = b_hh[2 * hidden_size:]                                      # (256,)

    return {"w_fold": w_fold,                     # (8,768)   f32
            "b_fold": b_fold[None, :],            # (1,768)   f32
            "b_hn": b_hn[None, :],                # (1,256)   f32
            "w_sty": w_sty,                       # (256,256) f32
            "b_sty": b_sty[None, :]}              # (1,256)   f32


# ------------------- host-side string adaptation (non-tensor) -----------------
# TODO(synk): string branching has no tensor / Pallas equivalent; it runs
# host-side on the kernel's style scores.
def _simplify_german(text):
    simplifications = {"Gebühr": "Preis", "Antragstellung": "Antrag machen",
                       "Personalausweis": "Ausweis", "Bürgerbüro": "Amt",
                       "vereinbaren": "machen", "Dokument": "Papier"}
    for complex_word, simple_word in simplifications.items():
        text = text.replace(complex_word, simple_word)
    return text


def _apply_style_modifications(response, style_scores, context):
    if style_scores["formality"] > 0.7:
        response = response.replace("Hi", "Guten Tag")
        response = response.replace("Euro", "Euro (Gebühr)")
    elif style_scores["formality"] < 0.3:
        response = "Hey! " + response
    if style_scores["detail_level"] > 0.7:
        response += " Weitere Details finden Sie auf unserer Webseite."
    elif style_scores["detail_level"] < 0.3:
        sentences = response.split(".")
        response = sentences[0] + "."
    if style_scores["empathy"] > 0.7:
        response = "Gerne helfe ich Ihnen weiter. " + response
    if context.get("user_language_level", 1.0) < 0.5:
        response = _simplify_german(response)
    if context.get("urgency", 0.0) > 0.8:
        response = "WICHTIG: " + response + " Bitte beachten Sie die Fristen!"
    return response


def liquid_context_adapter_forward(base_response, context, params):
    vals = [float(context.get(k, 0.5)) for k in CTX_KEYS]
    ctx = jnp.asarray(vals, dtype=jnp.float32)                         # (5,) SMEM
    out = run_adapter_kernel(ctx, params)                              # (1,512)
    # single device->host transfer; the 4x mean-of-64 happens in numpy
    out_host = np.asarray(jax.device_get(out))[0]
    scores = out_host[HIDDEN:].reshape(N_STYLES, STYLE_OUT).mean(axis=1)
    style_scores = {k: float(scores[i]) for i, k in enumerate(STYLE_KEYS)}
    adapted = _apply_style_modifications(base_response, style_scores, context)
    hidden = out[:, :HIDDEN]                                           # (1,256) device
    return adapted, style_scores, hidden


# ------------------------------ numpy reference -------------------------------
def _reference(ctx_vals, params):
    """Pure-numpy forward on the folded parameters (same math, host precision)."""
    w_fold = np.asarray(params["w_fold"], np.float32)[:N_CTX]          # (5,768)
    b_fold = np.asarray(params["b_fold"], np.float32)[0]
    b_hn = np.asarray(params["b_hn"], np.float32)[0]
    w_sty = np.asarray(params["w_sty"], np.float32)
    b_sty = np.asarray(params["b_sty"], np.float32)[0]
    gi = ctx_vals @ w_fold + b_fold
    sig = lambda x: 1.0 / (1.0 + np.exp(-x))
    H = HIDDEN
    r = sig(gi[0:H]); z = sig(gi[H:2 * H])
    n = np.tanh(gi[2 * H:3 * H] + r * b_hn)
    h = (1.0 - z) * n
    s = sig(h @ w_sty + b_sty)
    return h, s.reshape(N_STYLES, STYLE_OUT).mean(axis=1)


if __name__ == "__main__":
    key = jax.random.PRNGKey(0)
    pkey, ckey = jax.random.split(key)
    params = init_params(pkey, HIDDEN)

    ctx_vals = jax.random.uniform(ckey, (N_CTX,), jnp.float32)
    context = {k: float(ctx_vals[i]) for i, k in enumerate(CTX_KEYS)}
    base_response = ("Hi, die Antragstellung für den Personalausweis kostet "
                     "37 Euro. Bitte vereinbaren Sie einen Termin im Bürgerbüro.")

    adapted, style_scores, hidden = liquid_context_adapter_forward(
        base_response, context, params)
    jax.block_until_ready(hidden)

    # shape / range checks
    assert hidden.shape == (1, HIDDEN)
    assert len(style_scores) == N_STYLES
    assert all(0.0 <= v <= 1.0 for v in style_scores.values())
    assert isinstance(adapted, str) and len(adapted) > 0

    # numerical check against a pure-numpy reference of the same folded math
    ref_h, ref_scores = _reference(np.asarray(ctx_vals, np.float32), params)
    np.testing.assert_allclose(np.asarray(hidden)[0], ref_h, atol=1e-4, rtol=1e-4)
    np.testing.assert_allclose(
        np.asarray([style_scores[k] for k in STYLE_KEYS]), ref_scores,
        atol=1e-4, rtol=1e-4)

    print("KERNEL_OK")
</pallas_src>

<mosaic_0001>
module attributes {stable_mosaic.version = 11 : i64} {
  func.func @adapter_kernel(%arg0: memref<5xf32, #tpu.memory_space<smem>>, %arg1: memref<8x768xf32, #tpu.memory_space<vmem>>, %arg2: memref<1x768xf32, #tpu.memory_space<vmem>>, %arg3: memref<1x256xf32, #tpu.memory_space<vmem>>, %arg4: memref<256x256xf32, #tpu.memory_space<vmem>>, %arg5: memref<1x256xf32, #tpu.memory_space<vmem>>, %arg6: memref<1x512xf32, #tpu.memory_space<vmem>>) attributes {dimension_semantics = [], scalar_prefetch = 0 : i64, scratch_operands = 0 : i64, tpu.core_type = #tpu.core_type<tc>} {
    %c0 = arith.constant 0 : index
    %c0_0 = arith.constant 0 : index
    %0 = vector.load %arg2[%c0, %c0_0] : memref<1x768xf32, #tpu.memory_space<vmem>>, vector<1x768xf32>
    %c0_1 = arith.constant 0 : index
    %1 = memref.load %arg0[%c0_1] : memref<5xf32, #tpu.memory_space<smem>>
    %c0_2 = arith.constant 0 : index
    %c0_3 = arith.constant 0 : index
    %2 = vector.load %arg1[%c0_2, %c0_3] : memref<8x768xf32, #tpu.memory_space<vmem>>, vector<1x768xf32>
    %3 = vector.broadcast %1 : f32 to vector<1x768xf32>
    %4 = arith.mulf %3, %2 : vector<1x768xf32>
    %5 = arith.addf %0, %4 : vector<1x768xf32>
    %c1 = arith.constant 1 : index
    %6 = memref.load %arg0[%c1] : memref<5xf32, #tpu.memory_space<smem>>
    %c1_4 = arith.constant 1 : index
    %c0_5 = arith.constant 0 : index
    %7 = vector.load %arg1[%c1_4, %c0_5] : memref<8x768xf32, #tpu.memory_space<vmem>>, vector<1x768xf32>
    %8 = vector.broadcast %6 : f32 to vector<1x768xf32>
    %9 = arith.mulf %8, %7 : vector<1x768xf32>
    %10 = arith.addf %5, %9 : vector<1x768xf32>
    %c2 = arith.constant 2 : index
    %11 = memref.load %arg0[%c2] : memref<5xf32, #tpu.memory_space<smem>>
    %c2_6 = arith.constant 2 : index
    %c0_7 = arith.constant 0 : index
    %12 = vector.load %arg1[%c2_6, %c0_7] : memref<8x768xf32, #tpu.memory_space<vmem>>, vector<1x768xf32>
    %13 = vector.broadcast %11 : f32 to vector<1x768xf32>
    %14 = arith.mulf %13, %12 : vector<1x768xf32>
    %15 = arith.addf %10, %14 : vector<1x768xf32>
    %c3 = arith.constant 3 : index
    %16 = memref.load %arg0[%c3] : memref<5xf32, #tpu.memory_space<smem>>
    %c3_8 = arith.constant 3 : index
    %c0_9 = arith.constant 0 : index
    %17 = vector.load %arg1[%c3_8, %c0_9] : memref<8x768xf32, #tpu.memory_space<vmem>>, vector<1x768xf32>
    %18 = vector.broadcast %16 : f32 to vector<1x768xf32>
    %19 = arith.mulf %18, %17 : vector<1x768xf32>
    %20 = arith.addf %15, %19 : vector<1x768xf32>
    %c4 = arith.constant 4 : index
    %21 = memref.load %arg0[%c4] : memref<5xf32, #tpu.memory_space<smem>>
    %c4_10 = arith.constant 4 : index
    %c0_11 = arith.constant 0 : index
    %22 = vector.load %arg1[%c4_10, %c0_11] : memref<8x768xf32, #tpu.memory_space<vmem>>, vector<1x768xf32>
    %23 = vector.broadcast %21 : f32 to vector<1x768xf32>
    %24 = arith.mulf %23, %22 : vector<1x768xf32>
    %25 = arith.addf %20, %24 : vector<1x768xf32>
    %26 = vector.extract_strided_slice %25 {offsets = [0, 0], sizes = [1, 256], strides = [1, 1]} : vector<1x768xf32> to vector<1x256xf32>
    %27 = arith.negf %26 : vector<1x256xf32>
    %28 = math.exp %27 : vector<1x256xf32>
    %cst = arith.constant 1.000000e+00 : f32
    %29 = vector.broadcast %cst : f32 to vector<1x256xf32>
    %30 = arith.addf %29, %28 : vector<1x256xf32>
    %31 = arith.divf %29, %30 : vector<1x256xf32>
    %32 = vector.extract_strided_slice %25 {offsets = [0, 256], sizes = [1, 256], strides = [1, 1]} : vector<1x768xf32> to vector<1x256xf32>
    %33 = arith.negf %32 : vector<1x256xf32>
    %34 = math.exp %33 : vector<1x256xf32>
    %cst_12 = arith.constant 1.000000e+00 : f32
    %35 = vector.broadcast %cst_12 : f32 to vector<1x256xf32>
    %36 = arith.addf %35, %34 : vector<1x256xf32>
    %37 = arith.divf %35, %36 : vector<1x256xf32>
    %38 = vector.extract_strided_slice %25 {offsets = [0, 512], sizes = [1, 256], strides = [1, 1]} : vector<1x768xf32> to vector<1x256xf32>
    %c0_13 = arith.constant 0 : index
    %c0_14 = arith.constant 0 : index
    %39 = vector.load %arg3[%c0_13, %c0_14] : memref<1x256xf32, #tpu.memory_space<vmem>>, vector<1x256xf32>
    %40 = arith.mulf %31, %39 : vector<1x256xf32>
    %41 = arith.addf %38, %40 : vector<1x256xf32>
    %42 = math.tanh %41 : vector<1x256xf32>
    %cst_15 = arith.constant 1.000000e+00 : f32
    %43 = vector.broadcast %cst_15 : f32 to vector<1x256xf32>
    %44 = arith.subf %43, %37 : vector<1x256xf32>
    %45 = arith.mulf %44, %42 : vector<1x256xf32>
    %c0_16 = arith.constant 0 : index
    %c0_17 = arith.constant 0 : index
    %46 = vector.load %arg6[%c0_16, %c0_17] : memref<1x512xf32, #tpu.memory_space<vmem>>, vector<1x256xf32>
    tpu.vector_store %arg6[%c0_16, %c0_17], %45 {strides = array<i32>} : memref<1x512xf32, #tpu.memory_space<vmem>>, vector<1x256xf32>,
    %c0_18 = arith.constant 0 : index
    %c0_19 = arith.constant 0 : index
    %47 = vector.load %arg4[%c0_18, %c0_19] : memref<256x256xf32, #tpu.memory_space<vmem>>, vector<256x256xf32>
    %cst_20 = arith.constant dense<0.000000e+00> : vector<1x256xf32>
    %48 = tpu.matmul %45, %47, %cst_20 {dimension_numbers = #tpu.dot_dimension_numbers<[1], [0], [0], [1], [0, 0, 1, 1], [], []>, precision = #tpu.contract_precision<fp32>} : vector<1x256xf32>, vector<256x256xf32>, vector<1x256xf32> -> vector<1x256xf32>
    %c0_21 = arith.constant 0 : index
    %c0_22 = arith.constant 0 : index
    %49 = vector.load %arg5[%c0_21, %c0_22] : memref<1x256xf32, #tpu.memory_space<vmem>>, vector<1x256xf32>
    %50 = arith.addf %48, %49 : vector<1x256xf32>
    %51 = arith.negf %50 : vector<1x256xf32>
    %52 = math.exp %51 : vector<1x256xf32>
    %cst_23 = arith.constant 1.000000e+00 : f32
    %53 = vector.broadcast %cst_23 : f32 to vector<1x256xf32>
    %54 = arith.addf %53, %52 : vector<1x256xf32>
    %55 = arith.divf %53, %54 : vector<1x256xf32>
    %c0_24 = arith.constant 0 : index
    %c256 = arith.constant 256 : index
    %56 = vector.load %arg6[%c0_24, %c256] : memref<1x512xf32, #tpu.memory_space<vmem>>, vector<1x256xf32>
    tpu.vector_store %arg6[%c0_24, %c256], %55 {strides = array<i32>} : memref<1x512xf32, #tpu.memory_space<vmem>>, vector<1x256xf32>,
    return
  }
}

</mosaic_0001>

<bundles_post_ra>
// kernel: run_adapter_kernel.1
= control target key start
LH: loop header
LB: loop body
LE: loop exit
PB: predicated region body
PF: predicated region fallthrough
CT: control target
= control target key end

     0   :  { %11 = vsyncpa [#allocation5], 0  ;;  %s3029_s0 = inlined_call_operand.hbm [shape: f32[5], index: 0, kind: input, shape index: {}]   ;;  %s3030_s1 = inlined_call_operand.hbm [shape: f32[8,768], index: 1, kind: input, shape index: {}]   ;;  %s3031_s2 = inlined_call_operand.hbm [shape: f32[1,768], index: 2, kind: input, shape index: {}]   ;;  %s3032_s3 = inlined_call_operand.vmem [shape: f32[1,256], index: 3, kind: input, shape index: {}]   ;;  %s3033_s4 = inlined_call_operand.hbm [shape: f32[256,256], index: 4, kind: input, shape index: {}]   ;;  %s3034_s5 = inlined_call_operand.vmem [shape: f32[1,256], index: 5, kind: input, shape index: {}]   ;;  %s3035_s6 = inlined_call_operand.hbm [shape: f32[1,512], index: 6, kind: output, shape index: {}]  }
   0x1   :  { %12 = vsyncpa [#allocation3], 0 }
   0x2   :  { %13 = vsyncpa [#allocation8], 0 }
   0x3   :  { %14 = vsyncpa [#allocation4], 0  ;;  %s2095_s21 = smov [#allocation7]   ;;  %s2096_s23 = smov [#allocation6]  }
   0x4   :  { %s39_s22 = sshll.u32 %s2095_s21, 4  ;;  %s29_s24 = sshll.u32 %s2096_s23, 4  ;;  %s40_s22 = int_to_ptr.vmem [resolvable:$true] %s39_s22  ;;  %s30_s24 = int_to_ptr.vmem [resolvable:$true] %s29_s24 }
   0x5   :  { %s1989_s27 = scalar_lea.hbm %s3031_s2, 96 }
   0x6   :  { %p1990_p0 = scmp.ne.s32.totalorder %s3031_s2, %s1989_s27  ;;  %p1993_p1 = scmp.lt.u32.totalorder %s1989_s27, %s3031_s2 }
   0x8   :  { %p1995_p2 = pnand %p1993_p1, %p1990_p0 }
   0xa   :  { %1998 = shalt.err (!%p1995_p2)
}
   0xb   :  { %s1999_s8 = scalar_lea.vmem %s40_s22, 96  ;;  %p2004_p4 = scmp.lt.s32.totalorder %s40_s22, %s40_s22 }
   0xc   :  { %p2000_p3 = scmp.ne.s32.totalorder %s40_s22, %s1999_s8  ;;  %p2005_p5 = scmp.lt.s32.totalorder %s1999_s8, %s1999_s8 }
   0xe   :  { %p2006_p6 = por %p2005_p5, %p2004_p4 }
  0x10   :  { %p2007_p7 = pnand %p2006_p6, %p2000_p3 }
  0x12   :  { %2010 = shalt.err (!%p2007_p7)
}
  0x13   :  { %42 = dma.hbm_to_vmem [thread:$0]  %s3031_s2, 96, %s40_s22, [#allocation8]  }
  0x14   :  { %s2011_s13 = scalar_lea.hbm %s3029_s0, 16 }
  0x15   :  { %p2012_p8 = scmp.ne.s32.totalorder %s3029_s0, %s2011_s13  ;;  %p2015_p9 = scmp.lt.u32.totalorder %s2011_s13, %s3029_s0 }
  0x17   :  { %p2017_p10 = pnand %p2015_p9, %p2012_p8 }
  0x19   :  { %2020 = shalt.err (!%p2017_p10)
}
  0x1a   :  { %s2097_s18 = smov [#allocation2]   ;;  %s2021_s22 = scalar_lea.hbm %s3030_s1, 768 }
  0x1b   :  { %22 = dma.hbm_to_smem %s3029_s0, 16, %s2097_s18, [#allocation5]  }
  0x1c   :  { %p2022_p11 = scmp.ne.s32.totalorder %s3030_s1, %s2021_s22  ;;  %p2025_p12 = scmp.lt.u32.totalorder %s2021_s22, %s3030_s1 }
  0x1e   :  { %p2027_p13 = pnand %p2025_p12, %p2022_p11 }
  0x20   :  { %2030 = shalt.err (!%p2027_p13)
}
  0x21   :  { %s2031_s28 = scalar_lea.vmem %s30_s24, 768  ;;  %p2036_p1 = scmp.lt.s32.totalorder %s30_s24, %s30_s24 }
  0x22   :  { %p2032_p0 = scmp.ne.s32.totalorder %s30_s24, %s2031_s28  ;;  %p2037_p2 = scmp.lt.s32.totalorder %s2031_s28, %s2031_s28 }
  0x24   :  { %p2038_p3 = por %p2037_p2, %p2036_p1 }
  0x26   :  { %p2039_p4 = pnand %p2038_p3, %p2032_p0 }
  0x28   :  { %2042 = shalt.err (!%p2039_p4)
}
  0x29   :  { %32 = dma.hbm_to_vmem [thread:$0]  %s3030_s1, 768, %s30_s24, [#allocation3]  }
  0x2a   :  { %s2098_s30 = smov [#allocation9]   ;;  %s2043_s10 = scalar_lea.hbm %s3033_s4, 8192 }
  0x2b   :  { %s50_s7 = sshll.u32 %s2098_s30, 4  ;;  %p2044_p5 = scmp.ne.s32.totalorder %s3033_s4, %s2043_s10  ;;  %s51_s7 = int_to_ptr.vmem [resolvable:$true] %s50_s7 }
  0x2c   :  { %p2047_p6 = scmp.lt.u32.totalorder %s2043_s10, %s3033_s4 }
  0x2e   :  { %p2049_p7 = pnand %p2047_p6, %p2044_p5 }
  0x30   :  { %2052 = shalt.err (!%p2049_p7)
}
  0x31   :  { %s2053_s15 = scalar_lea.vmem %s51_s7, 8192  ;;  %p2058_p9 = scmp.lt.s32.totalorder %s51_s7, %s51_s7 }
  0x32   :  { %p2054_p8 = scmp.ne.s32.totalorder %s51_s7, %s2053_s15  ;;  %p2059_p10 = scmp.lt.s32.totalorder %s2053_s15, %s2053_s15 }
  0x34   :  { %p2060_p11 = por %p2059_p10, %p2058_p9 }
  0x36   :  { %p2061_p12 = pnand %p2060_p11, %p2054_p8 }
  0x38   :  { %2064 = shalt.err (!%p2061_p12)
}
  0x39   :  { %s2099_s1 = smov 256   ;;  %s2100_s24 = smov 16  }
  0x3a   :  { %56 = dma.hbm_to_vmem [thread:$0]  %s3033_s4, 8192, %s51_s7, [#allocation8], %s2099_s1, %s2099_s1, %s2100_s24  }
  0x3b   :  { %2087 = dma.done.wait [#allocation5], 16  }
  0x3c   :  { %2088 = vsyncadd [#allocation5], 4294967280 }
  0x3d   :  { %2089 = dma.done.wait [#allocation3], 768  }
  0x3e   :  { %2090 = vsyncadd [#allocation3], 4294966528 }
  0x3f   :  { %2091 = dma.done.wait [#allocation8], 8288  }
  0x40   :  { %2092 = vsyncadd [#allocation8], 4294959008 }
  0x41   :  { %71 = sfence }
  0x42   :  { %v141_v0 = vld [vmem:[#allocation9 + $0x8] sm:$0xff]  ;;  %v143_v1 = vld [vmem:[#allocation9 + $0x18] sm:$0xff]  ;;  %v140_v2 = vld [vmem:[#allocation9] sm:$0xff]  ;;  %s2354_s4 = sld [smem:[#allocation2]]  ;;  %s2356_s18 = sld [smem:[#allocation2 + $0x1]] }
  0x43   :  { %v227_v3 = vand.u32 4294901760, %v141_v0  ;;  %v231_v4 = vand.u32 4294901760, %v143_v1  ;;  %v142_v5 = vld [vmem:[#allocation9 + $0x10] sm:$0xff]  ;;  %v229_v6 = vand.u32 4294901760, %v140_v2  ;;  %v145_v7 = vld [vmem:[#allocation9 + $0x28] sm:$0xff]  ;;  %v147_v8 = vld [vmem:[#allocation9 + $0x38] sm:$0xff] }
  0x44   :  { %v233_v9 = vand.u32 4294901760, %v142_v5  ;;  %v235_v10 = vand.u32 4294901760, %v145_v7  ;;  %v239_v11 = vand.u32 4294901760, %v147_v8  ;;  %v144_v12 = vld [vmem:[#allocation9 + $0x20] sm:$0xff]  ;;  %v146_v13 = vld [vmem:[#allocation9 + $0x30] sm:$0xff]  ;;  %v149_v14 = vld [vmem:[#allocation9 + $0x48] sm:$0xff] }
  0x45   :  { %v2186_v16 = vpack.c.bf16 %v231_v4, %v227_v3  ;;  %v2188_v17 = vsub.f32 %v141_v0, %v227_v3  ;;  %v2190_v18 = vsub.f32 %v143_v1, %v231_v4  ;;  %v2192_v19 = vsub.f32 %v140_v2, %v229_v6  ;;  %v151_v20 = vld [vmem:[#allocation9 + $0x58] sm:$0xff]  ;;  %v148_v21 = vld [vmem:[#allocation9 + $0x40] sm:$0xff]  ;;  %v150_v22 = vld [vmem:[#allocation9 + $0x50] sm:$0xff]  ;;  %s2364_s19 = sld [smem:[#allocation2 + $0x2]]  ;;  %s2374_s20 = sld [smem:[#allocation2 + $0x3]] }
  0x46   :  { %v2194_v23 = vpack.c.bf16 %v233_v9, %v229_v6  ;;  %v2196_v24 = vsub.f32 %v142_v5, %v233_v9  ;;  %v2198_v25 = vpack.c.bf16 %v239_v11, %v235_v10  ;;  %v2200_v26 = vsub.f32 %v145_v7, %v235_v10  ;;  %v153_v27 = vld [vmem:[#allocation9 + $0x68] sm:$0xff]  ;;  %v155_v28 = vld [vmem:[#allocation9 + $0x78] sm:$0xff]  ;;  %v152_v37 = vld [vmem:[#allocation9 + $0x60] sm:$0xff]  ;;  %s2384_s2 = sld [smem:[#allocation2 + $0x4]] }
  0x47   :  { %3151 = vst [vmem:[#allocation15_spill] sm:$0xff] %v2186_v16  ;;  %3152 = vst [vmem:[#allocation16_spill] sm:$0xff] %v2188_v17  ;;  %1760 = vmatprep.subr.bf16.mxu0 %v2186_v16  ;;  %1568 = vmatprep.subr.bf16.mxu1 %v2186_v16  ;;  %v2204_v29 = vsub.f32 %v147_v8, %v239_v11  ;;  %v237_v30 = vand.u32 4294901760, %v144_v12  ;;  %v241_v31 = vand.u32 4294901760, %v146_v13  ;;  %v243_v32 = vand.u32 4294901760, %v149_v14  ;;  %v154_v42 = vld [vmem:[#allocation9 + $0x70] sm:$0xff] }
  0x48   :  { %3153 = vst [vmem:[#allocation17_spill] sm:$0xff] %v2190_v18  ;;  %3154 = vst [vmem:[#allocation18_spill] sm:$0xff] %v2192_v19  ;;  %1762 = vmatpush1.bf16.msra.mxu0 %v2194_v23  ;;  %1570 = vmatpush1.bf16.msra.mxu1 %v2194_v23  ;;  %v247_v33 = vand.u32 4294901760, %v151_v20  ;;  %v245_v34 = vand.u32 4294901760, %v148_v21  ;;  %v249_v35 = vand.u32 4294901760, %v150_v22  ;;  %v251_v36 = vand.u32 4294901760, %v153_v27 }
  0x49   :  { %3155 = vst [vmem:[#allocation19_spill] sm:$0xff] %v2194_v23  ;;  %3156 = vst [vmem:[#allocation20_spill] sm:$0xff] %v2196_v24  ;;  %1764 = vmatprep.subr.bf16.mxu0 %v2198_v25  ;;  %v2209_v38 = vpack.c.bf16 %v241_v31, %v237_v30  ;;  %v2211_v39 = vsub.f32 %v144_v12, %v237_v30  ;;  %v2213_v40 = vsub.f32 %v146_v13, %v241_v31  ;;  %v157_v43 = vld [vmem:[#allocation9 + $0x88] sm:$0xff]  ;;  %v159_v44 = vld [vmem:[#allocation9 + $0x98] sm:$0xff] }
  0x4a   :  { %3157 = vst [vmem:[#allocation21_spill] sm:$0xff] %v2198_v25  ;;  %3158 = vst [vmem:[#allocation22_spill] sm:$0xff] %v2200_v26  ;;  %1572 = vmatprep.subr.bf16.mxu1 %v2198_v25  ;;  %v255_v41 = vand.u32 4294901760, %v155_v28  ;;  %v2216_v45 = vpack.c.bf16 %v247_v33, %v243_v32  ;;  %v2218_v46 = vsub.f32 %v149_v14, %v243_v32  ;;  %v156_v49 = vld [vmem:[#allocation9 + $0x80] sm:$0xff]  ;;  %v158_v50 = vld [vmem:[#allocation9 + $0x90] sm:$0xff]  ;;  %v253_v57 = vand.u32 4294901760, %v152_v37 }
  0x4b   :  { %3159 = vst [vmem:[#allocation23_spill] sm:$0xff] %v2204_v29  ;;  %3160 = vst [vmem:[#allocation24_spill] sm:$0xff] %v2209_v38  ;;  %v2220_v47 = vsub.f32 %v151_v20, %v247_v33  ;;  %v2222_v48 = vpack.c.bf16 %v249_v35, %v245_v34  ;;  %v161_v51 = vld [vmem:[#allocation9 + $0xa8] sm:$0xff]  ;;  %v2224_v52 = vsub.f32 %v148_v21, %v245_v34  ;;  %v257_v58 = vand.u32 4294901760, %v154_v42  ;;  %v163_v60 = vld [vmem:[#allocation9 + $0xb8] sm:$0xff] }
  0x4c   :  { %3161 = vst [vmem:[#allocation25_spill] sm:$0xff] %v2211_v39  ;;  %3162 = vst [vmem:[#allocation26_spill] sm:$0xff] %v2213_v40  ;;  %v2226_v53 = vsub.f32 %v150_v22, %v249_v35  ;;  %v2228_v54 = vpack.c.bf16 %v255_v41, %v251_v36  ;;  %v2230_v55 = vsub.f32 %v153_v27, %v251_v36  ;;  %1766 = vmatpush1.bf16.msra.mxu0 %v2209_v38  ;;  %v160_v1 = vld [vmem:[#allocation9 + $0xa0] sm:$0xff]  ;;  %v162_v2 = vld [vmem:[#allocation9 + $0xb0] sm:$0xff] }
  0x4d   :  { %3163 = vst [vmem:[#allocation27_spill] sm:$0xff] %v2216_v45  ;;  %3164 = vst [vmem:[#allocation28_spill] sm:$0xff] %v2218_v46  ;;  %1574 = vmatpush1.bf16.msra.mxu1 %v2209_v38  ;;  %v2234_v56 = vsub.f32 %v155_v28, %v255_v41  ;;  %v259_v59 = vand.u32 4294901760, %v157_v43  ;;  %1768 = vmatprep.subr.bf16.mxu0 %v2216_v45  ;;  %v263_v61 = vand.u32 4294901760, %v159_v44  ;;  %v261_v62 = vand.u32 4294901760, %v156_v49  ;;  %v165_v7 = vld [vmem:[#allocation9 + $0xc8] sm:$0xff] }
  0x4e   :  { %3165 = vst [vmem:[#allocation29_spill] sm:$0xff] %v2220_v47  ;;  %3166 = vst [vmem:[#allocation30_spill] sm:$0xff] %v2222_v48  ;;  %1576 = vmatprep.subr.bf16.mxu1 %v2216_v45  ;;  %v265_v63 = vand.u32 4294901760, %v158_v50  ;;  %v267_v0 = vand.u32 4294901760, %v161_v51  ;;  %v2238_v3 = vpack.c.bf16 %v257_v58, %v253_v57  ;;  %v2240_v4 = vsub.f32 %v152_v37, %v253_v57  ;;  %v167_v8 = vld [vmem:[#allocation9 + $0xd8] sm:$0xff]  ;;  %v164_v9 = vld [vmem:[#allocation9 + $0xc0] sm:$0xff] }
  0x4f   :  { %3167 = vst [vmem:[#allocation31_spill] sm:$0xff] %v2228_v54  ;;  %v2242_v5 = vsub.f32 %v154_v42, %v257_v58  ;;  %v2244_v6 = vsub.f32 %v157_v43, %v259_v59  ;;  %v2246_v10 = vpack.c.bf16 %v263_v61, %v259_v59  ;;  %v2248_v11 = vsub.f32 %v159_v44, %v263_v61  ;;  %v166_v14 = vld [vmem:[#allocation9 + $0xd0] sm:$0xff]  ;;  %v169_v33 = vld [vmem:[#allocation9 + $0xe8] sm:$0xff]  ;;  %v171_v41 = vld [vmem:[#allocation9 + $0xf8] sm:$0xff] }
  0x50   :  { %3168 = vst [vmem:[#allocation32_spill] sm:$0xff] %v2238_v3  ;;  %v2250_v12 = vpack.c.bf16 %v265_v63, %v261_v62  ;;  %v2252_v13 = vsub.f32 %v156_v49, %v261_v62  ;;  %1770 = vmatpush1.bf16.msra.mxu0 %v2222_v48  ;;  %v2256_v20 = vsub.f32 %v158_v50, %v265_v63  ;;  %v271_v21 = vand.u32 4294901760, %v163_v60  ;;  %v168_v42 = vld [vmem:[#allocation9 + $0xe0] sm:$0xff]  ;;  %v170_v43 = vld [vmem:[#allocation9 + $0xf0] sm:$0xff]  ;;  %v173_v57 = vld [vmem:[#allocation9 + $0x108] sm:$0xff] }
  0x51   :  { %3169 = vst [vmem:[#allocation33_spill] sm:$0xff] %v2246_v10  ;;  %1578 = vmatpush1.bf16.msra.mxu1 %v2222_v48  ;;  %v2258_v22 = vsub.f32 %v161_v51, %v267_v0  ;;  %v269_v27 = vand.u32 4294901760, %v160_v1  ;;  %1772 = vmatprep.subr.bf16.mxu0 %v2228_v54  ;;  %v273_v28 = vand.u32 4294901760, %v162_v2  ;;  %v275_v30 = vand.u32 4294901760, %v165_v7  ;;  %v175_v58 = vld [vmem:[#allocation9 + $0x118] sm:$0xff]  ;;  %v172_v59 = vld [vmem:[#allocation9 + $0x100] sm:$0xff] }
  0x52   :  { %3170 = vst [vmem:[#allocation34_spill] sm:$0xff] %v2250_v12  ;;  %1580 = vmatprep.subr.bf16.mxu1 %v2228_v54  ;;  %v279_v31 = vand.u32 4294901760, %v167_v8  ;;  %v277_v32 = vand.u32 4294901760, %v164_v9  ;;  %v2262_v34 = vpack.c.bf16 %v271_v21, %v267_v0  ;;  %v2264_v35 = vsub.f32 %v163_v60, %v271_v21  ;;  %v174_v21 = vld [vmem:[#allocation9 + $0x110] sm:$0xff]  ;;  %v179_v15 = vld [vmem:[#allocation9 + $0x138] sm:$0xff]  ;;  %v181_v45 = vld [vmem:[#allocation9 + $0x148] sm:$0xff] }
  0x53   :  { %v2266_v36 = vsub.f32 %v160_v1, %v269_v27  ;;  %v281_v37 = vand.u32 4294901760, %v166_v14  ;;  %v2268_v44 = vpack.c.bf16 %v273_v28, %v269_v27  ;;  %v2270_v49 = vsub.f32 %v162_v2, %v273_v28  ;;  %v183_v38 = vld [vmem:[#allocation9 + $0x158] sm:$0xff]  ;;  %v182_v25 = vld [vmem:[#allocation9 + $0x150] sm:$0xff]  ;;  %v185_v23 = vld [vmem:[#allocation9 + $0x168] sm:$0xff] }
  0x54   :  { %3171 = vst [vmem:[#allocation35_spill] sm:$0xff] %v2262_v34  ;;  %v2272_v50 = vpack.c.bf16 %v279_v31, %v275_v30  ;;  %v2274_v51 = vsub.f32 %v165_v7, %v275_v30  ;;  %1774 = vmatpush1.bf16.msra.mxu0 %v2238_v3  ;;  %v2278_v60 = vsub.f32 %v167_v8, %v279_v31  ;;  %v283_v63 = vand.u32 4294901760, %v169_v33  ;;  %v177_v31 = vld [vmem:[#allocation9 + $0x128] sm:$0xff] }
  0x55   :  { %3172 = vst [vmem:[#allocation36_spill] sm:$0xff] %v2268_v44  ;;  %1582 = vmatpush1.bf16.msra.mxu1 %v2238_v3  ;;  %v2280_v61 = vpack.c.bf16 %v281_v37, %v277_v32  ;;  %v2282_v62 = vsub.f32 %v164_v9, %v277_v32  ;;  %1776 = vmatprep.subr.bf16.mxu0 %v2246_v10  ;;  %v287_v1 = vand.u32 4294901760, %v171_v41  ;;  %v285_v2 = vand.u32 4294901760, %v168_v42 }
  0x56   :  { %3173 = vst [vmem:[#allocation37_spill] sm:$0xff] %v2272_v50  ;;  %3174 = vst [vmem:[#allocation38_spill] sm:$0xff] %v2274_v51  ;;  %1584 = vmatprep.subr.bf16.mxu1 %v2246_v10  ;;  %v2286_v0 = vsub.f32 %v166_v14, %v281_v37  ;;  %v289_v7 = vand.u32 4294901760, %v170_v43  ;;  %v2288_v27 = vsub.f32 %v169_v33, %v283_v63  ;;  %v291_v28 = vand.u32 4294901760, %v173_v57  ;;  %v176_v14 = vld [vmem:[#allocation9 + $0x120] sm:$0xff]  ;;  %v178_v37 = vld [vmem:[#allocation9 + $0x130] sm:$0xff] }
  0x57   :  { %3175 = vst [vmem:[#allocation39_spill] sm:$0xff] %v2278_v60  ;;  %3176 = vst [vmem:[#allocation40_spill] sm:$0xff] %v2280_v61  ;;  %v295_v8 = vand.u32 4294901760, %v175_v58  ;;  %v293_v30 = vand.u32 4294901760, %v172_v59  ;;  %v2290_v9 = vpack.c.bf16 %v287_v1, %v283_v63  ;;  %v2292_v32 = vsub.f32 %v171_v41, %v287_v1 }
  0x58   :  { %3177 = vst [vmem:[#allocation41_spill] sm:$0xff] %v2282_v62  ;;  %3178 = vst [vmem:[#allocation42_spill] sm:$0xff] %v2286_v0  ;;  %v2294_v3 = vpack.c.bf16 %v289_v7, %v285_v2  ;;  %v2296_v10 = vsub.f32 %v168_v42, %v285_v2  ;;  %1778 = vmatpush1.bf16.msra.mxu0 %v2250_v12  ;;  %v2300_v33 = vsub.f32 %v170_v43, %v289_v7  ;;  %v99_v60 = vld [vmem:[#allocation6 + $0x3] ss:$8 sm:$0x30] }
  0x59   :  { %3179 = vst [vmem:[#allocation43_spill] sm:$0xff] %v2288_v27  ;;  %3180 = vst [vmem:[#allocation44_spill] sm:$0xff] %v2290_v9  ;;  %1586 = vmatpush1.bf16.msra.mxu1 %v2250_v12  ;;  %v2302_v54 = vpack.c.bf16 %v295_v8, %v291_v28  ;;  %v2304_v48 = vsub.f32 %v173_v57, %v291_v28  ;;  %v297_v63 = vand.u32 4294901760, %v174_v21  ;;  %1780 = vmatprep.subr.bf16.mxu0 %v2262_v34  ;;  %v180_v28 = vld [vmem:[#allocation9 + $0x140] sm:$0xff] }
  0x5a   :  { %3181 = vst [vmem:[#allocation45_spill] sm:$0xff] %v2292_v32  ;;  %3182 = vst [vmem:[#allocation46_spill] sm:$0xff] %v2294_v3  ;;  %1588 = vmatprep.subr.bf16.mxu1 %v2262_v34  ;;  %v2308_v41 = vsub.f32 %v175_v58, %v295_v8  ;;  %v2310_v42 = vsub.f32 %v172_v59, %v293_v30  ;;  %v299_v1 = vand.u32 4294901760, %v177_v31  ;;  %v303_v2 = vand.u32 4294901760, %v179_v15  ;;  %v187_v8 = vld [vmem:[#allocation9 + $0x178] sm:$0xff]  ;;  %v184_v34 = vld [vmem:[#allocation9 + $0x160] sm:$0xff] }
  0x5b   :  { %3183 = vst [vmem:[#allocation47_spill] sm:$0xff] %v2296_v10  ;;  %3184 = vst [vmem:[#allocation48_spill] sm:$0xff] %v2300_v33  ;;  %v2312_v12 = vpack.c.bf16 %v297_v63, %v293_v30  ;;  %v2314_v43 = vsub.f32 %v174_v21, %v297_v63  ;;  %v301_v7 = vand.u32 4294901760, %v176_v14  ;;  %v305_v57 = vand.u32 4294901760, %v178_v37  ;;  %v195_v33 = vld [vmem:[#allocation9 + $0x1b8] sm:$0xff]  ;;  %v196_v10 = vld [vmem:[#allocation9 + $0x1c0] sm:$0xff] }
  0x5c   :  { %3185 = vst [vmem:[#allocation49_spill] sm:$0xff] %v2302_v54  ;;  %3186 = vst [vmem:[#allocation50_spill] sm:$0xff] %v2304_v48  ;;  %v2316_v16 = vpack.c.bf16 %v303_v2, %v299_v1  ;;  %v2318_v48 = vsub.f32 %v177_v31, %v299_v1  ;;  %v2320_v58 = vsub.f32 %v179_v15, %v303_v2  ;;  %v307_v59 = vand.u32 4294901760, %v181_v45  ;;  %v82_v27 = vld [vmem:[#allocation6 + $0x1] ss:$8 sm:$0xf] }
  0x5d   :  { %3187 = vst [vmem:[#allocation51_spill] sm:$0xff] %v2308_v41  ;;  %3188 = vst [vmem:[#allocation52_spill] sm:$0xff] %v2310_v42  ;;  %1782 = vmatpush1.bf16.msra.mxu0 %v2268_v44  ;;  %1590 = vmatpush1.bf16.msra.mxu1 %v2268_v44  ;;  %v2324_v21 = vpack.c.bf16 %v305_v57, %v301_v7  ;;  %v2326_v30 = vsub.f32 %v176_v14, %v301_v7  ;;  %v309_v31 = vand.u32 4294901760, %v180_v28 }
  0x5e   :  { %3189 = vst [vmem:[#allocation53_spill] sm:$0xff] %v2312_v12  ;;  %3190 = vst [vmem:[#allocation54_spill] sm:$0xff] %v2314_v43  ;;  %v2328_v63 = vsub.f32 %v178_v37, %v305_v57  ;;  %v311_v43 = vand.u32 4294901760, %v183_v38  ;;  %1784 = vmatprep.subr.bf16.mxu0 %v2272_v50  ;;  %1592 = vmatprep.subr.bf16.mxu1 %v2272_v50  ;;  %v2332_v15 = vsub.f32 %v181_v45, %v307_v59  ;;  %v191_v37 = vld [vmem:[#allocation9 + $0x198] sm:$0xff]  ;;  %v188_v57 = vld [vmem:[#allocation9 + $0x180] sm:$0xff] }
  0x5f   :  { %3191 = vst [vmem:[#allocation55_spill] sm:$0xff] %v2316_v16  ;;  %3192 = vst [vmem:[#allocation56_spill] sm:$0xff] %v2318_v48  ;;  %v313_v1 = vand.u32 4294901760, %v182_v25  ;;  %v315_v2 = vand.u32 4294901760, %v185_v23  ;;  %v189_v48 = vld [vmem:[#allocation9 + $0x188] sm:$0xff]  ;;  %v319_v14 = vand.u32 4294901760, %v187_v8  ;;  %v2340_v41 = vsub.f32 %v180_v28, %v309_v31 }
  0x60   :  { %3193 = vst [vmem:[#allocation57_spill] sm:$0xff] %v2320_v58  ;;  %3194 = vst [vmem:[#allocation58_spill] sm:$0xff] %v2324_v21  ;;  %v186_v58 = vld [vmem:[#allocation9 + $0x170] sm:$0xff]  ;;  %v2334_v42 = vpack.c.bf16 %v311_v43, %v307_v59  ;;  %v2336_v44 = vsub.f32 %v183_v38, %v311_v43  ;;  %v317_v7 = vand.u32 4294901760, %v184_v34  ;;  %v325_v28 = vand.u32 4294901760, %v188_v57 }
  0x61   :  { %3195 = vst [vmem:[#allocation59_spill] sm:$0xff] %v2326_v30  ;;  %3196 = vst [vmem:[#allocation60_spill] sm:$0xff] %v2328_v63  ;;  %v190_v63 = vld [vmem:[#allocation9 + $0x190] sm:$0xff]  ;;  %v2338_v30 = vpack.c.bf16 %v313_v1, %v309_v31  ;;  %v2342_v45 = vsub.f32 %v182_v25, %v313_v1  ;;  %v2344_v50 = vsub.f32 %v185_v23, %v315_v2  ;;  %1786 = vmatpush1.bf16.msra.mxu0 %v2280_v61  ;;  %v192_v1 = vld [vmem:[#allocation9 + $0x1a0] sm:$0xff] }
  0x62   :  { %3197 = vst [vmem:[#allocation61_spill] sm:$0xff] %v2332_v15  ;;  %3198 = vst [vmem:[#allocation62_spill] sm:$0xff] %v2334_v42  ;;  %v193_v15 = vld [vmem:[#allocation9 + $0x1a8] sm:$0xff]  ;;  %1594 = vmatpush1.bf16.msra.mxu1 %v2280_v61  ;;  %v2348_v38 = vpack.c.bf16 %v319_v14, %v315_v2  ;;  %v2350_v43 = vsub.f32 %v187_v8, %v319_v14  ;;  %v321_v59 = vand.u32 4294901760, %v186_v58  ;;  %1788 = vmatprep.subr.bf16.mxu0 %v2290_v9  ;;  %v194_v61 = vld [vmem:[#allocation9 + $0x1b0] sm:$0xff] }
  0x63   :  { %3199 = vst [vmem:[#allocation63_spill] sm:$0xff] %v2336_v44  ;;  %3200 = vst [vmem:[#allocation64_spill] sm:$0xff] %v2338_v30  ;;  %v2352_v44 = vsub.f32 %v184_v34, %v317_v7  ;;  %1596 = vmatprep.subr.bf16.mxu1 %v2290_v9  ;;  %v323_v23 = vand.u32 4294901760, %v189_v48  ;;  %v327_v25 = vand.u32 4294901760, %v191_v37  ;;  %v329_v31 = vand.u32 4294901760, %v190_v63 }
  0x64   :  { %3201 = vst [vmem:[#allocation65_spill] sm:$0xff] %v2340_v41  ;;  %3202 = vst [vmem:[#allocation66_spill] sm:$0xff] %v2342_v45  ;;  %v2360_v2 = vpack.c.bf16 %v321_v59, %v317_v7  ;;  %v2362_v8 = vsub.f32 %v186_v58, %v321_v59  ;;  %v331_v14 = vand.u32 4294901760, %v193_v15  ;;  %v335_v34 = vand.u32 4294901760, %v195_v33  ;;  %v199_v41 = vld [vmem:[#allocation9 + $0x1d8] sm:$0xff]  ;;  %v198_v7 = vld [vmem:[#allocation9 + $0x1d0] sm:$0xff] }
  0x65   :  { %3203 = vst [vmem:[#allocation67_spill] sm:$0xff] %v2344_v50  ;;  %3204 = vst [vmem:[#allocation68_spill] sm:$0xff] %v2348_v38  ;;  %v2368_v50 = vsub.f32 %v189_v48, %v323_v23  ;;  %v2370_v9 = vsub.f32 %v191_v37, %v327_v25  ;;  %v2372_v45 = vpack.c.bf16 %v329_v31, %v325_v28  ;;  %1790 = vmatpush1.bf16.msra.mxu0 %v2294_v3  ;;  %v201_v37 = vld [vmem:[#allocation9 + $0x1e8] sm:$0xff] }
  0x66   :  { %3205 = vst [vmem:[#allocation69_spill] sm:$0xff] %v2350_v43  ;;  %3206 = vst [vmem:[#allocation70_spill] sm:$0xff] %v2352_v44  ;;  %v197_v44 = vld [vmem:[#allocation9 + $0x1c8] sm:$0xff]  ;;  %v2366_v43 = vpack.c.bf16 %v327_v25, %v323_v23  ;;  %1598 = vmatpush1.bf16.msra.mxu1 %v2294_v3  ;;  %v2378_v58 = vsub.f32 %v188_v57, %v325_v28  ;;  %v2380_v59 = vsub.f32 %v190_v63, %v329_v31  ;;  %v203_v23 = vld [vmem:[#allocation9 + $0x1f8] sm:$0xff] }
  0x67   :  { %3207 = vst [vmem:[#allocation71_spill] sm:$0xff] %v2360_v2  ;;  %3208 = vst [vmem:[#allocation72_spill] sm:$0xff] %v2362_v8  ;;  %v2382_v8 = vpack.c.bf16 %v335_v34, %v331_v14  ;;  %v333_v48 = vand.u32 4294901760, %v192_v1  ;;  %1792 = vmatprep.subr.bf16.mxu0 %v2302_v54  ;;  %1600 = vmatprep.subr.bf16.mxu1 %v2302_v54  ;;  %v2388_v25 = vsub.f32 %v193_v15, %v331_v14  ;;  %v200_v28 = vld [vmem:[#allocation9 + $0x1e0] sm:$0xff] }
  0x68   :  { %3209 = vst [vmem:[#allocation73_spill] sm:$0xff] %v2366_v43  ;;  %3210 = vst [vmem:[#allocation74_spill] sm:$0xff] %v2368_v50  ;;  %v337_v3 = vand.u32 4294901760, %v194_v61  ;;  %v339_v57 = vand.u32 4294901760, %v197_v44  ;;  %v341_v50 = vand.u32 4294901760, %v196_v10  ;;  %v345_v32 = vand.u32 4294901760, %v198_v7 }
  0x69   :  { %3211 = vst [vmem:[#allocation75_spill] sm:$0xff] %v2370_v9  ;;  %3212 = vst [vmem:[#allocation76_spill] sm:$0xff] %v2372_v45  ;;  %v2390_v9 = vsub.f32 %v195_v33, %v335_v34  ;;  %v74_v63 = vld [vmem:[#allocation6] ss:$8 sm:$0xf]  ;;  %v347_v15 = vand.u32 4294901760, %v201_v37  ;;  %1794 = vmatpush1.bf16.msra.mxu0 %v2312_v12 }
  0x6a   :  { %3213 = vst [vmem:[#allocation77_spill] sm:$0xff] %v2378_v58  ;;  %3214 = vst [vmem:[#allocation78_spill] sm:$0xff] %v2380_v59  ;;  %v75_v31 = vld [vmem:[#allocation6] ss:$8 sm:$0x30]  ;;  %v2392_v59 = vsub.f32 %v192_v1, %v333_v48  ;;  %v343_v58 = vand.u32 4294901760, %v199_v41  ;;  %v2394_v0 = vpack.c.bf16 %v337_v3, %v333_v48  ;;  %v2396_v62 = vsub.f32 %v194_v61, %v337_v3 }
  0x6b   :  { %3215 = vst [vmem:[#allocation79_spill] sm:$0xff] %v2382_v8  ;;  %3216 = vst [vmem:[#allocation80_spill] sm:$0xff] %v2388_v25  ;;  %v2398_v54 = vsub.f32 %v197_v44, %v339_v57  ;;  %v202_v33 = vld [vmem:[#allocation9 + $0x1f0] sm:$0xff]  ;;  %1602 = vmatpush1.bf16.msra.mxu1 %v2312_v12  ;;  %1796 = vmatprep.subr.bf16.mxu0 %v2316_v16  ;;  %v2410_v44 = vsub.f32 %v196_v10, %v341_v50 }
  0x6c   :  { %3217 = vst [vmem:[#allocation81_spill] sm:$0xff] %v2390_v9  ;;  %3218 = vst [vmem:[#allocation82_spill] sm:$0xff] %v2392_v59  ;;  %v83_v14 = vld [vmem:[#allocation6 + $0x1] ss:$8 sm:$0x30]  ;;  %v2402_v34 = vpack.c.bf16 %v343_v58, %v339_v57  ;;  %v2404_v1 = vsub.f32 %v199_v41, %v343_v58  ;;  %v2406_v59 = vpack.c.bf16 %v345_v32, %v341_v50  ;;  %v351_v9 = vand.u32 4294901760, %v203_v23 }
  0x6d   :  { %3219 = vst [vmem:[#allocation83_spill] sm:$0xff] %v2394_v0  ;;  %3220 = vst [vmem:[#allocation84_spill] sm:$0xff] %v2396_v62  ;;  %v90_v48 = vld [vmem:[#allocation6 + $0x2] ss:$8 sm:$0xf]  ;;  %1604 = vmatprep.subr.bf16.mxu1 %v2316_v16  ;;  %v2412_v61 = vsub.f32 %v198_v7, %v345_v32  ;;  %v2414_v12 = vsub.f32 %v201_v37, %v347_v15  ;;  %v349_v57 = vand.u32 4294901760, %v200_v28  ;;  %v77_v16 = vstv %s2354_s4 }
  0x6e   :  { %3221 = vst [vmem:[#allocation85_spill] sm:$0xff] %v2398_v54  ;;  %3222 = vst [vmem:[#allocation86_spill] sm:$0xff] %v2402_v34  ;;  %v91_v3 = vld [vmem:[#allocation6 + $0x2] ss:$8 sm:$0x30]  ;;  %v2416_v58 = vpack.c.bf16 %v351_v9, %v347_v15  ;;  %v353_v54 = vand.u32 4294901760, %v202_v33  ;;  %v76_v25 = vor.u32 %v75_v31, %v74_v63  ;;  %v84_v10 = vor.u32 %v83_v14, %v82_v27 }
  0x6f   :  { %3223 = vst [vmem:[#allocation87_spill] sm:$0xff] %v2404_v1  ;;  %3224 = vst [vmem:[#allocation88_spill] sm:$0xff] %v2406_v59  ;;  %v98_v41 = vld [vmem:[#allocation6 + $0x3] ss:$8 sm:$0xf]  ;;  %v2418_v1 = vsub.f32 %v203_v23, %v351_v9  ;;  %v2420_v51 = vsub.f32 %v200_v28, %v349_v57  ;;  %v85_v50 = vstv %s2356_s18  ;;  %1798 = vmatpush1.bf16.msra.mxu0 %v2324_v21  ;;  %1606 = vmatpush1.bf16.msra.mxu1 %v2324_v21 }
  0x70   :  { %3225 = vst [vmem:[#allocation89_spill] sm:$0xff] %v2412_v61  ;;  %3226 = vst [vmem:[#allocation90_spill] sm:$0xff] %v2414_v12  ;;  %v72_v62 = vld [vmem:[#allocation7] sm:$0x3f]  ;;  %v2426_v9 = vpack.c.bf16 %v353_v54, %v349_v57  ;;  %v2428_v37 = vsub.f32 %v202_v33, %v353_v54  ;;  %v78_v23 = vmul.f32 %v77_v16, %v76_v25  ;;  %v93_v63 = vstv %s2364_s19 }
  0x71   :  { %3227 = vst [vmem:[#allocation91_spill] sm:$0xff] %v2416_v58  ;;  %3228 = vst [vmem:[#allocation92_spill] sm:$0xff] %v2418_v1  ;;  %v106_v32 = vld [vmem:[#allocation6 + $0x4] ss:$8 sm:$0xf]  ;;  %1800 = vmatprep.subr.bf16.mxu0 %v2334_v42  ;;  %1608 = vmatprep.subr.bf16.mxu1 %v2334_v42  ;;  %v86_v28 = vmul.f32 %v85_v50, %v84_v10  ;;  %v92_v27 = vor.u32 %v91_v3, %v90_v48  ;;  %v101_v15 = vstv %s2374_s20  ;;  %v3231_v12 = vlaneseq }
  0x72   :  { %3229 = vst [vmem:[#allocation93_spill] sm:$0xff] %v2420_v51  ;;  %v107_v7 = vld [vmem:[#allocation6 + $0x4] ss:$8 sm:$0x30]  ;;  %3230 = vst [vmem:[#allocation94_spill] sm:$0xff] %v2426_v9  ;;  %v100_v31 = vor.u32 %v99_v60, %v98_v41  ;;  %v79_v14 = vadd.f32 %v78_v23, %v72_v62  ;;  %v109_v1 = vstv %s2384_s2  ;;  %v374_v54 = vand.u32 4294901760, %v2188_v17 }
  0x73   :  { %v108_v51 = vor.u32 %v107_v7, %v106_v32  ;;  %v2436_v61 = vshrl.u32 %v3231_v12, 7  ;;  %v94_v57 = vmul.f32 %v93_v63, %v92_v27  ;;  %v386_v16 = vand.u32 4294901760, %v2190_v18  ;;  %1802 = vmatpush1.bf16.msra.mxu0 %v2338_v30  ;;  %1610 = vmatpush1.bf16.msra.mxu1 %v2338_v30 }
  0x74   :  { %v102_v21 = vmul.f32 %v101_v15, %v100_v31  ;;  %v87_v25 = vadd.f32 %v86_v28, %v79_v14  ;;  %1804 = vmatprep.subr.bf16.mxu0 %v2348_v38  ;;  %1612 = vmatprep.subr.bf16.mxu1 %v2348_v38  ;;  %v380_v3 = vand.u32 4294901760, %v2192_v19  ;;  %v392_v41 = vand.u32 4294901760, %v2196_v24 }
  0x75   :  { %3232 = vst [vmem:[#allocation95_spill] sm:$0xff] %v2436_v61  ;;  %v110_v33 = vmul.f32 %v109_v1, %v108_v51  ;;  %v2446_v48 = vpack.c.bf16 %v386_v16, %v374_v54  ;;  %v375_v10 = vsub.f32 %v2188_v17, %v374_v54  ;;  %v387_v32 = vsub.f32 %v2190_v18, %v386_v16 }
  0x76   :  { %v95_v50 = vadd.f32 %v94_v57, %v87_v25  ;;  %v398_v51 = vand.u32 4294901760, %v2200_v26  ;;  %v410_v1 = vand.u32 4294901760, %v2204_v29  ;;  %v2454_v7 = vpack.c.bf16 %v392_v41, %v380_v3 }
  0x77   :  { %v376_v23 = vand.u32 4294901760, %v375_v10  ;;  %v381_v63 = vsub.f32 %v2192_v19, %v380_v3  ;;  %v393_v28 = vsub.f32 %v2196_v24, %v392_v41  ;;  %1806 = vmatpush1.bf16.msra.mxu0 %v2360_v2  ;;  %1614 = vmatpush1.bf16.msra.mxu1 %v2360_v2  ;;  %v388_v31 = vand.u32 4294901760, %v387_v32  ;;  %v3247_v24 = vld [vmem:[#allocation45_spill] sm:$0xff] }
  0x78   :  { %v103_v27 = vadd.f32 %v102_v21, %v95_v50  ;;  %v2460_v15 = vpack.c.bf16 %v410_v1, %v398_v51  ;;  %v404_v14 = vand.u32 4294901760, %v2211_v39  ;;  %1808 = vmatprep.subr.bf16.mxu0 %v2366_v43  ;;  %1616 = vmatprep.subr.bf16.mxu1 %v2366_v43  ;;  %v416_v16 = vand.u32 4294901760, %v2213_v40 }
  0x79   :  { %v382_v57 = vand.u32 4294901760, %v381_v63  ;;  %v394_v54 = vand.u32 4294901760, %v393_v28  ;;  %v399_v25 = vsub.f32 %v2200_v26, %v398_v51  ;;  %v2469_v41 = vpack.c.bf16 %v388_v31, %v376_v23 }
  0x7a   :  { %v2467_v3 = vadd.f32 %v110_v33, %v103_v27  ;;  %v411_v21 = vsub.f32 %v2204_v29, %v410_v1  ;;  %v422_v10 = vand.u32 4294901760, %v2218_v46  ;;  %v2475_v32 = vpack.c.bf16 %v416_v16, %v404_v14 }
  0x7b   :  { %v2473_v50 = vpack.c.bf16 %v394_v54, %v382_v57  ;;  %v400_v62 = vand.u32 4294901760, %v399_v25  ;;  %v434_v63 = vand.u32 4294901760, %v2220_v47  ;;  %1810 = vmatpush1.bf16.msra.mxu0 %v2372_v45  ;;  %1618 = vmatpush1.bf16.msra.mxu1 %v2372_v45  ;;  %v405_v27 = vsub.f32 %v2211_v39, %v404_v14 }
  0x7c   :  { %v1563_v33 = vmul.f32 -1.442695, %v2467_v3  ;;  %v119_v51 = vrot.slane %v2467_v3, 2  ;;  %v412_v1 = vand.u32 4294901760, %v411_v21  ;;  %1812 = vmatprep.subr.bf16.mxu0 %v2382_v8  ;;  %1620 = vmatprep.subr.bf16.mxu1 %v2382_v8  ;;  %v417_v31 = vsub.f32 %v2213_v40, %v416_v16 }
  0x7d   :  { %v2485_v28 = vpack.c.bf16 %v434_v63, %v422_v10  ;;  %v428_v57 = vand.u32 4294901760, %v2224_v52  ;;  %v440_v60 = vand.u32 4294901760, %v2226_v53  ;;  %v406_v23 = vand.u32 4294901760, %v405_v27 }
  0x7e   :  { %1971 = vpow2.f32 %v1563_v33  ;;  %v1564_v54 = vmul.f32 -1.442695, %v119_v51  ;;  %v2490_v25 = vpack.c.bf16 %v412_v1, %v400_v62  ;;  %v418_v21 = vand.u32 4294901760, %v417_v31 }
  0x7f   :  { %v423_v12 = vsub.f32 %v2218_v46, %v422_v10  ;;  %v435_v8 = vsub.f32 %v2220_v47, %v434_v63  ;;  %1814 = vmatpush1.bf16.msra.mxu0 %v2394_v0  ;;  %1622 = vmatpush1.bf16.msra.mxu1 %v2394_v0  ;;  %v2497_v14 = vpack.c.bf16 %v440_v60, %v428_v57  ;;  %v446_v16 = vand.u32 4294901760, %v2230_v55 }
  0x80   :  { %1973 = vpow2.f32 %v1564_v54  ;;  %v458_v62 = vand.u32 4294901760, %v2234_v56  ;;  %1816 = vmatprep.subr.bf16.mxu0 %v2402_v34  ;;  %1624 = vmatprep.subr.bf16.mxu1 %v2402_v34  ;;  %v2503_v33 = vpack.c.bf16 %v418_v21, %v406_v23  ;;  %v429_v63 = vsub.f32 %v2224_v52, %v428_v57 }
  0x81   :  { %v424_v10 = vand.u32 4294901760, %v423_v12  ;;  %v436_v51 = vand.u32 4294901760, %v435_v8  ;;  %v441_v27 = vsub.f32 %v2226_v53, %v440_v60  ;;  %v452_v31 = vand.u32 4294901760, %v2240_v4 }
  0x82   :  { %v2506_v1 = vpack.c.bf16 %v458_v62, %v446_v16  ;;  %v464_v54 = vand.u32 4294901760, %v2242_v5  ;;  %v430_v45 = vand.u32 4294901760, %v429_v63  ;;  %v447_v43 = vsub.f32 %v2230_v55, %v446_v16 }
  0x83   :  { %v2511_v0 = vpack.c.bf16 %v436_v51, %v424_v10  ;;  %v459_v23 = vsub.f32 %v2234_v56, %v458_v62  ;;  %1818 = vmatpush1.bf16.msra.mxu0 %v2406_v59  ;;  %1626 = vmatpush1.bf16.msra.mxu1 %v2406_v59  ;;  %v442_v12 = vand.u32 4294901760, %v441_v27  ;;  %v470_v60 = vand.u32 4294901760, %v2244_v6 }
  0x84   :  { %v2517_v8 = vpack.c.bf16 %v464_v54, %v452_v31  ;;  %v482_v57 = vand.u32 4294901760, %v2248_v11  ;;  %1820 = vmatprep.subr.bf16.mxu0 %v2416_v58  ;;  %1628 = vmatprep.subr.bf16.mxu1 %v2416_v58  ;;  %v448_v21 = vand.u32 4294901760, %v447_v43  ;;  %v453_v16 = vsub.f32 %v2240_v4, %v452_v31 }
  0x85   :  { %v460_v10 = vand.u32 4294901760, %v459_v23  ;;  %v465_v62 = vsub.f32 %v2242_v5, %v464_v54  ;;  %v2525_v51 = vpack.c.bf16 %v442_v12, %v430_v45  ;;  %v476_v27 = vand.u32 4294901760, %v2252_v13 }
  0x86   :  { %v2527_v63 = vpack.c.bf16 %v482_v57, %v470_v60  ;;  %v488_v59 = vand.u32 4294901760, %v2256_v20  ;;  %v454_v2 = vand.u32 4294901760, %v453_v16  ;;  %v471_v58 = vsub.f32 %v2244_v6, %v470_v60 }
  0x87   :  { %v2531_v34 = vpack.c.bf16 %v460_v10, %v448_v21  ;;  %v466_v38 = vand.u32 4294901760, %v465_v62  ;;  %1822 = vmatpush1.bf16.msra.mxu0 %v2426_v9  ;;  %1630 = vmatpush1.bf16.msra.mxu1 %v2426_v9  ;;  %v483_v45 = vsub.f32 %v2248_v11, %v482_v57  ;;  %v494_v54 = vand.u32 4294901760, %v2258_v22 }
  0x88   :  { %v1972_v43 = vpop.eup %1971  ;;  %v2536_v31 = vpack.c.bf16 %v488_v59, %v476_v27  ;;  %v506_v23 = vand.u32 4294901760, %v2264_v35  ;;  %1824 = vmatprep.subr.bf16.mxu0 %v2446_v48  ;;  %1632 = vmatprep.subr.bf16.mxu1 %v2469_v41  ;;  %v472_v60 = vand.u32 4294901760, %v471_v58  ;;  %v477_v10 = vsub.f32 %v2252_v13, %v476_v27  ;;  %v3238_v27 = vld [vmem:[#allocation38_spill] sm:$0xff] }
  0x89   :  { %v115_v12 = vadd.f32 1.0, %v1972_v43  ;;  %v2543_v21 = vpack.c.bf16 %v466_v38, %v454_v2  ;;  %v484_v62 = vand.u32 4294901760, %v483_v45  ;;  %v489_v57 = vsub.f32 %v2256_v20, %v488_v59  ;;  %v3239_v59 = vld [vmem:[#allocation39_spill] sm:$0xff] }
  0x8a   :  { %3233 = vst [vmem:[#allocation96_spill] sm:$0xff] %v2536_v31  ;;  %v1974_v16 = vpop.eup %1973  ;;  %v2546_v9 = vpack.c.bf16 %v506_v23, %v494_v54  ;;  %v500_v30 = vand.u32 4294901760, %v2266_v36  ;;  %v478_v43 = vand.u32 4294901760, %v477_v10  ;;  %v512_v48 = vand.u32 4294901760, %v2270_v49 }
  0x8b   :  { %3234 = vst [vmem:[#allocation97_spill] sm:$0xff] %v2543_v21  ;;  %1975 = vrcp.f32 %v115_v12  ;;  %v124_v42 = vadd.f32 1.0, %v1974_v16  ;;  %v2551_v47 = vpack.c.bf16 %v484_v62, %v472_v60  ;;  %v490_v38 = vand.u32 4294901760, %v489_v57 }
  0x8c   :  { %3235 = vst [vmem:[#allocation98_spill] sm:$0xff] %v2546_v9  ;;  %v495_v2 = vsub.f32 %v2258_v22, %v494_v54  ;;  %v507_v58 = vsub.f32 %v2264_v35, %v506_v23  ;;  %v2555_v41 = vpack.c.bf16 %v512_v48, %v500_v30  ;;  %v518_v45 = vand.u32 4294901760, %v3238_v27  ;;  %v3242_v54 = vld [vmem:[#allocation41_spill] sm:$0xff]  ;;  %v3243_v23 = vld [vmem:[#allocation42_spill] sm:$0xff] }
  0x8d   :  { %3236 = vst [vmem:[#allocation99_spill] sm:$0xff] %v2551_v47  ;;  %1977 = vrcp.f32 %v124_v42  ;;  %v530_v46 = vand.u32 4294901760, %v3239_v59  ;;  %v2559_v40 = vpack.c.bf16 %v490_v38, %v478_v43  ;;  %v501_v16 = vsub.f32 %v2266_v36, %v500_v30  ;;  %v3254_v9 = vld [vmem:[#allocation50_spill] sm:$0xff] }
  0x8e   :  { %3237 = vst [vmem:[#allocation100_spill] sm:$0xff] %v2555_v41  ;;  %v496_v12 = vand.u32 4294901760, %v495_v2  ;;  %v508_v10 = vand.u32 4294901760, %v507_v58  ;;  %v513_v62 = vsub.f32 %v2270_v49, %v512_v48  ;;  %v524_v57 = vand.u32 4294901760, %v3242_v54  ;;  %v3246_v58 = vld [vmem:[#allocation43_spill] sm:$0xff] }
  0x8f   :  { %3240 = vst [vmem:[#allocation38_spill] sm:$0xff] %v2559_v40  ;;  %v2562_v60 = vpack.c.bf16 %v530_v46, %v518_v45  ;;  %v536_v42 = vand.u32 4294901760, %v3243_v23  ;;  %v502_v29 = vand.u32 4294901760, %v501_v16  ;;  %v519_v26 = vsub.f32 %v3238_v27, %v518_v45 }
  0x90   :  { %v2567_v39 = vpack.c.bf16 %v508_v10, %v496_v12  ;;  %v531_v43 = vsub.f32 %v3239_v59, %v530_v46  ;;  %v514_v38 = vand.u32 4294901760, %v513_v62  ;;  %v542_v30 = vand.u32 4294901760, %v3246_v58  ;;  %v127_v12 = vld [vmem:[%s3032_s3] sm:$0x3]  ;;  %v3250_v10 = vld [vmem:[#allocation47_spill] sm:$0xff]  ;;  %v3251_v62 = vld [vmem:[#allocation48_spill] sm:$0xff] }
  0x91   :  { %3241 = vst [vmem:[#allocation39_spill] sm:$0xff] %v2562_v60  ;;  %v2571_v2 = vpack.c.bf16 %v536_v42, %v524_v57  ;;  %v554_v19 = vand.u32 4294901760, %v3247_v24  ;;  %v520_v18 = vand.u32 4294901760, %v519_v26  ;;  %v525_v17 = vsub.f32 %v3242_v54, %v524_v57 }
  0x92   :  { %3244 = vst [vmem:[#allocation41_spill] sm:$0xff] %v2567_v39  ;;  %v532_v48 = vand.u32 4294901760, %v531_v43  ;;  %v537_v60 = vsub.f32 %v3243_v23, %v536_v42  ;;  %v2580_v45 = vpack.c.bf16 %v514_v38, %v502_v29  ;;  %v548_v16 = vand.u32 4294901760, %v3250_v10  ;;  %v3255_v38 = vld [vmem:[#allocation51_spill] sm:$0xff]  ;;  %v3260_v23 = vld [vmem:[#allocation54_spill] sm:$0xff] }
  0x93   :  { %3245 = vst [vmem:[#allocation101_spill] sm:$0xff] %v2571_v2  ;;  %v2582_v46 = vpack.c.bf16 %v554_v19, %v542_v30  ;;  %v560_v2 = vand.u32 4294901760, %v3251_v62  ;;  %v526_v26 = vand.u32 4294901760, %v525_v17  ;;  %v543_v57 = vsub.f32 %v3246_v58, %v542_v30 }
  0x94   :  { %3248 = vst [vmem:[#allocation102_spill] sm:$0xff] %v2580_v45  ;;  %v2586_v39 = vpack.c.bf16 %v532_v48, %v520_v18  ;;  %v538_v43 = vand.u32 4294901760, %v537_v60  ;;  %v555_v40 = vsub.f32 %v3247_v24, %v554_v19  ;;  %v566_v29 = vand.u32 4294901760, %v3254_v9 }
  0x95   :  { %3249 = vst [vmem:[#allocation103_spill] sm:$0xff] %v2582_v46  ;;  %v1976_v41 = vpop.eup %1975  ;;  %v2589_v42 = vpack.c.bf16 %v560_v2, %v548_v16  ;;  %v578_v45 = vand.u32 4294901760, %v3255_v38  ;;  %v544_v31 = vand.u32 4294901760, %v543_v57  ;;  %v549_v18 = vsub.f32 %v3250_v10, %v548_v16  ;;  %v3330_v10 = vld [vmem:[#allocation98_spill] sm:$0xff] }
  0x96   :  { %3252 = vst [vmem:[#allocation104_spill] sm:$0xff] %v2586_v39  ;;  %v128_v46 = vmul.f32 %v1976_v41, %v127_v12  ;;  %v2594_v47 = vpack.c.bf16 %v538_v43, %v526_v26  ;;  %v556_v17 = vand.u32 4294901760, %v555_v40  ;;  %v561_v30 = vsub.f32 %v3251_v62, %v560_v2  ;;  %v3258_v39 = vld [vmem:[#allocation52_spill] sm:$0xff] }
  0x97   :  { %3253 = vst [vmem:[#allocation105_spill] sm:$0xff] %v2589_v42  ;;  %v1978_v48 = vpop.eup %1977  ;;  %v2597_v60 = vpack.c.bf16 %v578_v45, %v566_v29  ;;  %v572_v42 = vand.u32 4294901760, %v3258_v39  ;;  %v3259_v19 = vrot.slane %v2467_v3, 4  ;;  %v550_v58 = vand.u32 4294901760, %v549_v18  ;;  %v3263_v2 = vld [vmem:[#allocation56_spill] sm:$0xff] }
  0x98   :  { %3256 = vst [vmem:[#allocation106_spill] sm:$0xff] %v2594_v47  ;;  %v133_v24 = vsub.f32 1.0, %v1978_v48  ;;  %v584_v41 = vand.u32 4294901760, %v3260_v23  ;;  %v2604_v12 = vpack.c.bf16 %v556_v17, %v544_v31  ;;  %v562_v26 = vand.u32 4294901760, %v561_v30 }
  0x99   :  { %3257 = vst [vmem:[#allocation107_spill] sm:$0xff] %v2597_v60  ;;  %v131_v21 = vadd.f32 %v3259_v19, %v128_v46  ;;  %v567_v16 = vsub.f32 %v3254_v9, %v566_v29  ;;  %v579_v40 = vsub.f32 %v3255_v38, %v578_v45  ;;  %v590_v57 = vand.u32 4294901760, %v3263_v2  ;;  %v3264_v60 = vld [vmem:[#allocation57_spill] sm:$0xff]  ;;  %v3267_v29 = vld [vmem:[#allocation59_spill] sm:$0xff]  ;;  %v3268_v45 = vld [vmem:[#allocation60_spill] sm:$0xff] }
  0x9a   :  { %3261 = vst [vmem:[#allocation108_spill] sm:$0xff] %v2604_v12  ;;  %v2608_v43 = vpack.c.bf16 %v584_v41, %v572_v42  ;;  %v602_v47 = vand.u32 4294901760, %v3264_v60  ;;  %v2612_v3 = vpack.c.bf16 %v562_v26, %v550_v58  ;;  %v573_v48 = vsub.f32 %v3258_v39, %v572_v42  ;;  %v3332_v9 = vld [vmem:[#allocation66_spill] sm:$0xff] }
  0x9b   :  { %1979 = vtanh.f32 %v131_v21  ;;  %v568_v46 = vand.u32 4294901760, %v567_v16  ;;  %v580_v18 = vand.u32 4294901760, %v579_v40  ;;  %v585_v17 = vsub.f32 %v3260_v23, %v584_v41  ;;  %v3271_v40 = vld [vmem:[#allocation61_spill] sm:$0xff] }
  0x9c   :  { %3262 = vst [vmem:[#allocation109_spill] sm:$0xff] %v2608_v43  ;;  %3265 = vst [vmem:[#allocation110_spill] sm:$0xff] %v2612_v3  ;;  %v2615_v31 = vpack.c.bf16 %v602_v47, %v590_v57  ;;  %v596_v30 = vand.u32 4294901760, %v3267_v29  ;;  %v608_v21 = vand.u32 4294901760, %v3268_v45  ;;  %v574_v43 = vand.u32 4294901760, %v573_v48  ;;  %v3272_v3 = vld [vmem:[#allocation63_spill] sm:$0xff] }
  0x9d   :  { %v2620_v19 = vpack.c.bf16 %v580_v18, %v568_v46  ;;  %v591_v12 = vsub.f32 %v3263_v2, %v590_v57  ;;  %v603_v58 = vsub.f32 %v3264_v60, %v602_v47  ;;  %v586_v26 = vand.u32 4294901760, %v585_v17  ;;  %v3275_v57 = vld [vmem:[#allocation65_spill] sm:$0xff]  ;;  %v3276_v47 = vld [vmem:[#allocation66_spill] sm:$0xff] }
  0x9e   :  { %3266 = vst [vmem:[#allocation111_spill] sm:$0xff] %v2615_v31  ;;  %v2624_v16 = vpack.c.bf16 %v608_v21, %v596_v30  ;;  %v614_v42 = vand.u32 4294901760, %v3271_v40  ;;  %v626_v31 = vand.u32 4294901760, %v3272_v3  ;;  %v597_v23 = vsub.f32 %v3267_v29, %v596_v30 }
  0x9f   :  { %3269 = vst [vmem:[#allocation112_spill] sm:$0xff] %v2620_v19  ;;  %v592_v39 = vand.u32 4294901760, %v591_v12  ;;  %v604_v41 = vand.u32 4294901760, %v603_v58  ;;  %v609_v38 = vsub.f32 %v3268_v45, %v608_v21  ;;  %v2630_v46 = vpack.c.bf16 %v586_v26, %v574_v43  ;;  %v3279_v58 = vld [vmem:[#allocation67_spill] sm:$0xff]  ;;  %v3280_v43 = vld [vmem:[#allocation69_spill] sm:$0xff]  ;;  %v3348_v62 = vld [vmem:[#allocation106_spill] sm:$0xff] }
  0xa0   :  { %3270 = vst [vmem:[#allocation113_spill] sm:$0xff] %v2624_v16  ;;  %v2632_v18 = vpack.c.bf16 %v626_v31, %v614_v42  ;;  %v620_v48 = vand.u32 4294901760, %v3275_v57  ;;  %v632_v17 = vand.u32 4294901760, %v3276_v47  ;;  %v598_v16 = vand.u32 4294901760, %v597_v23 }
  0xa1   :  { %3273 = vst [vmem:[#allocation114_spill] sm:$0xff] %v2630_v46  ;;  %v2636_v19 = vpack.c.bf16 %v604_v41, %v592_v39  ;;  %v610_v60 = vand.u32 4294901760, %v609_v38  ;;  %v615_v2 = vsub.f32 %v3271_v40, %v614_v42  ;;  %v627_v30 = vsub.f32 %v3272_v3, %v626_v31  ;;  %v3283_v42 = vld [vmem:[#allocation70_spill] sm:$0xff] }
  0xa2   :  { %3274 = vst [vmem:[#allocation115_spill] sm:$0xff] %v2632_v18  ;;  %v2639_v12 = vpack.c.bf16 %v632_v17, %v620_v48  ;;  %v638_v21 = vand.u32 4294901760, %v3279_v58  ;;  %v650_v26 = vand.u32 4294901760, %v3280_v43  ;;  %v621_v45 = vsub.f32 %v3275_v57, %v620_v48 }
  0xa3   :  { %3277 = vst [vmem:[#allocation116_spill] sm:$0xff] %v2636_v19  ;;  %v2644_v46 = vpack.c.bf16 %v610_v60, %v598_v16  ;;  %v616_v18 = vand.u32 4294901760, %v615_v2  ;;  %v633_v39 = vsub.f32 %v3276_v47, %v632_v17  ;;  %v628_v23 = vand.u32 4294901760, %v627_v30  ;;  %v3288_v17 = vld [vmem:[#allocation74_spill] sm:$0xff] }
  0xa4   :  { %3278 = vst [vmem:[#allocation117_spill] sm:$0xff] %v2639_v12  ;;  %v2648_v38 = vpack.c.bf16 %v650_v26, %v638_v21  ;;  %v644_v19 = vand.u32 4294901760, %v3283_v42  ;;  %v3284_v12 = vld [vmem:[#allocation72_spill] sm:$0xff]  ;;  %v622_v3 = vand.u32 4294901760, %v621_v45  ;;  %v639_v60 = vsub.f32 %v3279_v58, %v638_v21  ;;  %v3295_v58 = vld [vmem:[#allocation78_spill] sm:$0xff] }
  0xa5   :  { %3281 = vst [vmem:[#allocation118_spill] sm:$0xff] %v2644_v46  ;;  %v1980_v41 = vpop.eup %1979  ;;  %v656_v40 = vand.u32 4294901760, %v3284_v12  ;;  %v634_v29 = vand.u32 4294901760, %v633_v39  ;;  %v2655_v16 = vpack.c.bf16 %v628_v23, %v616_v18  ;;  %v651_v48 = vsub.f32 %v3280_v43, %v650_v26  ;;  %v3292_v18 = vld [vmem:[#allocation75_spill] sm:$0xff]  ;;  %v3294_v43 = vld [vmem:[#allocation77_spill] sm:$0xff] }
  0xa6   :  { %3282 = vst [vmem:[#allocation119_spill] sm:$0xff] %v2648_v38  ;;  %v2652_v31 = vmul.f32 %v1980_v41, %v133_v24  ;;  %v662_v30 = vand.u32 4294901760, %v3288_v17  ;;  %v3289_v38 = vsub.s32 1, %v2436_v61  ;;  %v3290_v47 = vsub.s32 0, %v2436_v61 }
  0xa7   :  { %3286 = vst [vmem:[#allocation121_spill] sm:$0xff] %v2655_v16  ;;  %v2657_v2 = vpack.c.bf16 %v656_v40, %v644_v19  ;;  %v2667_v45 = vpack.c.bf16 %v634_v29, %v622_v3  ;;  %v640_v39 = vand.u32 4294901760, %v639_v60  ;;  %v652_v21 = vand.u32 4294901760, %v651_v48 }
  0xa8   :  { %3285 = vst [vmem:[#allocation120_spill] sm:$0xff] %v2652_v31  ;;  %v213_v46 = vrot.slane %v2652_v31, %v3289_v38  ;;  %v209_v24 = vrot.slane %v2652_v31, %v3290_v47  ;;  %v674_v41 = vand.u32 4294901760, %v3292_v18  ;;  %v645_v23 = vsub.f32 %v3283_v42, %v644_v19 }
  0xa9   :  { %3287 = vst [vmem:[#allocation122_spill] sm:$0xff] %v2657_v2  ;;  %3291 = vst [vmem:[#allocation123_spill] sm:$0xff] %v2667_v45  ;;  %v657_v26 = vsub.f32 %v3284_v12, %v656_v40  ;;  %v668_v38 = vand.u32 4294901760, %v3294_v43  ;;  %v680_v61 = vand.u32 4294901760, %v3295_v58  ;;  %v2678_v57 = vpack.c.bf16 %v652_v21, %v640_v39  ;;  %v3302_v39 = vld [vmem:[#allocation80_spill] sm:$0xff] }
  0xaa   :  { %v2672_v2 = vand.u32 4294901760, %v213_v46  ;;  %v2674_v16 = vand.u32 4294901760, %v209_v24  ;;  %v2680_v3 = vpack.c.bf16 %v674_v41, %v662_v30  ;;  %v646_v29 = vand.u32 4294901760, %v645_v23 }
  0xab   :  { %3296 = vst [vmem:[#allocation77_spill] sm:$0xff] %v2678_v57  ;;  %v658_v47 = vand.u32 4294901760, %v657_v26  ;;  %v2688_v40 = vpack.c.bf16 %v680_v61, %v668_v38  ;;  %v663_v48 = vsub.f32 %v3288_v17, %v662_v30  ;;  %v675_v45 = vsub.f32 %v3292_v18, %v674_v41  ;;  %v3303_v57 = vld [vmem:[#allocation81_spill] sm:$0xff]  ;;  %v3306_v18 = vld [vmem:[#allocation84_spill] sm:$0xff] }
  0xac   :  { %3293 = vst [vmem:[#allocation124_spill] sm:$0xff] %v2674_v16  ;;  %3297 = vst [vmem:[#allocation125_spill] sm:$0xff] %v2680_v3  ;;  %v2683_v60 = vsub.f32 %v213_v46, %v2672_v2  ;;  %v2686_v19 = vsub.f32 %v209_v24, %v2674_v16  ;;  %v686_v21 = vand.u32 4294901760, %v3302_v39  ;;  %v698_v3 = vand.u32 4294901760, %v3303_v57 }
  0xad   :  { %3300 = vst [vmem:[#allocation128_spill] sm:$0xff] %v2688_v40  ;;  %v2691_v31 = vpack.c.bf16 %v658_v47, %v646_v29  ;;  %v664_v26 = vand.u32 4294901760, %v663_v48  ;;  %v669_v24 = vsub.f32 %v3294_v43, %v668_v38  ;;  %v676_v16 = vand.u32 4294901760, %v675_v45  ;;  %v3305_v29 = vld [vmem:[#allocation82_spill] sm:$0xff] }
  0xae   :  { %3298 = vst [vmem:[#allocation126_spill] sm:$0xff] %v2683_v60  ;;  %3299 = vst [vmem:[#allocation127_spill] sm:$0xff] %v2686_v19  ;;  %v357_v23 = vand.u32 4294901760, %v2683_v60  ;;  %v363_v46 = vand.u32 4294901760, %v2686_v19  ;;  %v2699_v12 = vpack.c.bf16 %v698_v3, %v686_v21  ;;  %v681_v30 = vsub.f32 %v3295_v58, %v680_v61 }
  0xaf   :  { %3301 = vst [vmem:[#allocation129_spill] sm:$0xff] %v2691_v31  ;;  %v692_v47 = vand.u32 4294901760, %v3305_v29  ;;  %v670_v31 = vand.u32 4294901760, %v669_v24  ;;  %v704_v17 = vand.u32 4294901760, %v3306_v18  ;;  %v2706_v42 = vpack.c.bf16 %v676_v16, %v664_v26  ;;  %v3309_v24 = vld [vmem:[#allocation87_spill] sm:$0xff] }
  0xb0   :  { %3304 = vst [vmem:[#allocation81_spill] sm:$0xff] %v2699_v12  ;;  %1099 = vmatprep.mubr.f32.mxu0 %v357_v23  ;;  %v358_v41 = vsub.f32 %v2683_v60, %v357_v23  ;;  %v364_v40 = vsub.f32 %v2686_v19, %v363_v46  ;;  %v682_v48 = vand.u32 4294901760, %v681_v30  ;;  %v687_v45 = vsub.f32 %v3302_v39, %v686_v21  ;;  %v3308_v23 = vld [vmem:[#allocation85_spill] sm:$0xff]  ;;  %v3343_v39 = vld [vmem:[#allocation39_spill] sm:$0xff] }
  0xb1   :  { %1103 = vmatmul.mubr.f32.vlgmr.msra.gmra.mrb[0].mxu0 %v363_v46  ;;  %v699_v38 = vsub.f32 %v3303_v57, %v698_v3  ;;  %v2711_v58 = vpack.c.bf16 %v704_v17, %v692_v47  ;;  %v710_v60 = vand.u32 4294901760, %v3308_v23  ;;  %v722_v21 = vand.u32 4294901760, %v3309_v24  ;;  %v3310_v30 = vld [vmem:[#allocation89_spill] sm:$0xff] }
  0xb2   :  { %1826 = vmatpush1.bf16.msra.mxu0 %v2454_v7  ;;  %v359_v61 = vand.u32 4294901760, %v358_v41  ;;  %v365_v12 = vand.u32 4294901760, %v364_v40  ;;  %1366 = vmatprep.mubr.f32.mxu0 %v2672_v2  ;;  %v2716_v46 = vpack.c.bf16 %v682_v48, %v670_v31  ;;  %v688_v16 = vand.u32 4294901760, %v687_v45  ;;  %v3312_v45 = vld [vmem:[#allocation90_spill] sm:$0xff] }
  0xb3   :  { %3307 = vst [vmem:[#allocation82_spill] sm:$0xff] %v2711_v58  ;;  %1828 = vmatprep.subr.bf16.mxu0 %v2460_v15  ;;  %v700_v26 = vand.u32 4294901760, %v699_v38  ;;  %v693_v3 = vsub.f32 %v3305_v29, %v692_v47  ;;  %v705_v7 = vsub.f32 %v3306_v18, %v704_v17  ;;  %v716_v40 = vand.u32 4294901760, %v2410_v44 }
  0xb4   :  { %360 = vmatprep.mubr.f32.mxu1 %v359_v61  ;;  %v728_v41 = vand.u32 4294901760, %v3310_v30  ;;  %v2725_v58 = vpack.c.bf16 %v722_v21, %v710_v60  ;;  %v711_v15 = vsub.f32 %v3308_v23, %v710_v60  ;;  %v723_v31 = vsub.f32 %v3309_v24, %v722_v21  ;;  %v3346_v23 = vld [vmem:[#allocation104_spill] sm:$0xff] }
  0xb5   :  { %366 = vmatmul.mubr.f32.vlgmr.msra.gmra.mrb[0].mxu1 %v365_v12  ;;  %v2723_v19 = vpack.c.bf16 %v700_v26, %v688_v16  ;;  %v694_v47 = vand.u32 4294901760, %v693_v3  ;;  %v706_v48 = vand.u32 4294901760, %v705_v7  ;;  %v734_v38 = vand.u32 4294901760, %v3312_v45  ;;  %v3313_v16 = vld [vmem:[#allocation92_spill] sm:$0xff] }
  0xb6   :  { %1634 = vmatpush1.bf16.msra.mxu1 %v2473_v50  ;;  %1830 = vmatpush1.bf16.msra.mxu0 %v2475_v32  ;;  %v2731_v17 = vpack.c.bf16 %v728_v41, %v716_v40  ;;  %v712_v12 = vand.u32 4294901760, %v711_v15  ;;  %v724_v61 = vand.u32 4294901760, %v723_v31  ;;  %v746_v60 = vand.u32 4294901760, %v3313_v16  ;;  %v3314_v32 = vld [vmem:[#allocation93_spill] sm:$0xff] }
  0xb7   :  { %1636 = vmatprep.subr.bf16.mxu1 %v2490_v25  ;;  %1832 = vmatprep.subr.bf16.mxu0 %v2485_v28  ;;  %v717_v26 = vsub.f32 %v2410_v44, %v716_v40  ;;  %v2738_v21 = vpack.c.bf16 %v706_v48, %v694_v47  ;;  %v729_v50 = vsub.f32 %v3310_v30, %v728_v41  ;;  %v740_v3 = vand.u32 4294901760, %v3314_v32 }
  0xb8   :  { %3311 = vst [vmem:[#allocation84_spill] sm:$0xff] %v2731_v17  ;;  %v752_v7 = vand.u32 4294901760, %v2428_v37  ;;  %757 = vmatprep.mubr.f32.mxu1 %v2672_v2  ;;  %v2744_v17 = vpack.c.bf16 %v724_v61, %v712_v12  ;;  %v2746_v25 = vpack.c.bf16 %v746_v60, %v734_v38  ;;  %v735_v15 = vsub.f32 %v3312_v45, %v734_v38  ;;  %v3349_v45 = vld [vmem:[#allocation105_spill] sm:$0xff] }
  0xb9   :  { %v718_v28 = vand.u32 4294901760, %v717_v26  ;;  %v730_v40 = vand.u32 4294901760, %v729_v50  ;;  %v747_v41 = vsub.f32 %v3313_v16, %v746_v60  ;;  %v741_v47 = vsub.f32 %v3314_v32, %v740_v3 }
  0xba   :  { %1638 = vmatpush1.bf16.msra.mxu1 %v2503_v33  ;;  %1834 = vmatpush1.bf16.msra.mxu0 %v2497_v14  ;;  %v2751_v31 = vpack.c.bf16 %v752_v7, %v740_v3  ;;  %v736_v48 = vand.u32 4294901760, %v735_v15  ;;  %v753_v12 = vsub.f32 %v2428_v37, %v752_v7  ;;  %v3322_v7 = vld [vmem:[#allocation96_spill] sm:$0xff]  ;;  %v3328_v14 = vld [vmem:[#allocation63_spill] sm:$0xff]  ;;  %v3337_v3 = vld [vmem:[#allocation74_spill] sm:$0xff] }
  0xbb   :  { %1640 = vmatprep.subr.bf16.mxu1 %v2511_v0  ;;  %1836 = vmatprep.subr.bf16.mxu0 %v2506_v1  ;;  %v2758_v61 = vpack.c.bf16 %v730_v40, %v718_v28  ;;  %v748_v38 = vand.u32 4294901760, %v747_v41  ;;  %v742_v33 = vand.u32 4294901760, %v741_v47  ;;  %v3317_v40 = vld [vmem:[#allocation45_spill] sm:$0xff]  ;;  %v3326_v1 = vld [vmem:[#allocation60_spill] sm:$0xff]  ;;  %v3329_v47 = vld [vmem:[#allocation99_spill] sm:$0xff] }
  0xbc   :  { %v754_v26 = vand.u32 4294901760, %v753_v12  ;;  %v3327_v41 = vld [vmem:[#allocation61_spill] sm:$0xff]  ;;  %v3338_v28 = vld [vmem:[#allocation75_spill] sm:$0xff]  ;;  %v3339_v0 = vld [vmem:[#allocation78_spill] sm:$0xff] }
  0xbd   :  { %v2764_v60 = vpack.c.bf16 %v748_v38, %v736_v48  ;;  %v3331_v12 = vld [vmem:[#allocation65_spill] sm:$0xff]  ;;  %v3333_v38 = vld [vmem:[#allocation67_spill] sm:$0xff]  ;;  %v3336_v48 = vld [vmem:[#allocation72_spill] sm:$0xff] }
  0xbe   :  { %1642 = vmatpush1.bf16.msra.mxu1 %v2525_v51  ;;  %1838 = vmatpush1.bf16.msra.mxu0 %v2517_v8  ;;  %v2772_v50 = vpack.c.bf16 %v754_v26, %v742_v33  ;;  %v3321_v51 = vld [vmem:[#allocation97_spill] sm:$0xff]  ;;  %v3340_v15 = vld [vmem:[#allocation38_spill] sm:$0xff]  ;;  %v3347_v33 = vld [vmem:[#allocation103_spill] sm:$0xff] }
  0xbf   :  { %1644 = vmatprep.subr.bf16.mxu1 %v2531_v34  ;;  %1840 = vmatprep.subr.bf16.mxu0 %v2527_v63  ;;  %v3315_v34 = vld [vmem:[#allocation42_spill] sm:$0xff]  ;;  %v3341_v63 = vld [vmem:[#allocation100_spill] sm:$0xff]  ;;  %v3345_v26 = vld [vmem:[#allocation101_spill] sm:$0xff] }
  0xc0   :  { %v3350_v8 = vld [vmem:[#allocation108_spill] sm:$0xff] }
  0xc2   :  { %1646 = vmatpush1.bf16.msra.mxu1 %v3321_v51  ;;  %1842 = vmatpush1.bf16.msra.mxu0 %v3322_v7  ;;  %v3334_v51 = vld [vmem:[#allocation69_spill] sm:$0xff]  ;;  %v3335_v7 = vld [vmem:[#allocation70_spill] sm:$0xff] }
  0xc3   :  { %1648 = vmatprep.subr.bf16.mxu1 %v3329_v47  ;;  %1844 = vmatprep.subr.bf16.mxu0 %v3330_v10  ;;  %v3342_v47 = vld [vmem:[#allocation41_spill] sm:$0xff]  ;;  %v3344_v10 = vld [vmem:[#allocation102_spill] sm:$0xff] }
  0xc6   :  { %1650 = vmatpush1.bf16.msra.mxu1 %v3340_v15  ;;  %1846 = vmatpush1.bf16.msra.mxu0 %v3341_v63  ;;  %v3351_v15 = vld [vmem:[#allocation107_spill] sm:$0xff]  ;;  %v3352_v63 = vld [vmem:[#allocation110_spill] sm:$0xff] }
  0xc7   :  { %1652 = vmatprep.subr.bf16.mxu1 %v3342_v47  ;;  %1848 = vmatprep.subr.bf16.mxu0 %v3343_v39  ;;  %v3353_v47 = vld [vmem:[#allocation109_spill] sm:$0xff]  ;;  %v3354_v39 = vld [vmem:[#allocation112_spill] sm:$0xff] }
  0xca   :  { %1654 = vmatpush1.bf16.msra.mxu1 %v3344_v10  ;;  %1850 = vmatpush1.bf16.msra.mxu0 %v3345_v26  ;;  %v3355_v10 = vld [vmem:[#allocation111_spill] sm:$0xff]  ;;  %v3356_v26 = vld [vmem:[#allocation114_spill] sm:$0xff] }
  0xcb   :  { %1656 = vmatprep.subr.bf16.mxu1 %v3346_v23  ;;  %1852 = vmatprep.subr.bf16.mxu0 %v3347_v33  ;;  %v3357_v23 = vld [vmem:[#allocation113_spill] sm:$0xff]  ;;  %v3358_v33 = vld [vmem:[#allocation116_spill] sm:$0xff] }
  0xce   :  { %1658 = vmatpush1.bf16.msra.mxu1 %v3348_v62  ;;  %1854 = vmatpush1.bf16.msra.mxu0 %v3349_v45  ;;  %v3359_v62 = vld [vmem:[#allocation115_spill] sm:$0xff]  ;;  %v3360_v45 = vld [vmem:[#allocation118_spill] sm:$0xff] }
  0xcf   :  { %1660 = vmatprep.subr.bf16.mxu1 %v3350_v8  ;;  %1856 = vmatprep.subr.bf16.mxu0 %v3351_v15  ;;  %v3361_v8 = vld [vmem:[#allocation117_spill] sm:$0xff] }
  0xd0   :  { %v3362_v15 = vld [vmem:[#allocation121_spill] sm:$0xff] }
  0xd2   :  { %1662 = vmatpush1.bf16.msra.mxu1 %v3352_v63  ;;  %1858 = vmatpush1.bf16.msra.mxu0 %v3353_v47  ;;  %v3363_v63 = vld [vmem:[#allocation119_spill] sm:$0xff] }
  0xd3   :  { %1664 = vmatprep.subr.bf16.mxu1 %v3354_v39  ;;  %1860 = vmatprep.subr.bf16.mxu0 %v3355_v10  ;;  %v3364_v47 = vld [vmem:[#allocation123_spill] sm:$0xff]  ;;  %v3365_v39 = vld [vmem:[#allocation122_spill] sm:$0xff]  ;;  %v3366_v10 = vld [vmem:[#allocation77_spill] sm:$0xff] }
  0xd6   :  { %1666 = vmatpush1.bf16.msra.mxu1 %v3356_v26  ;;  %1862 = vmatpush1.bf16.msra.mxu0 %v3357_v23  ;;  %v3367_v26 = vld [vmem:[#allocation125_spill] sm:$0xff] }
  0xd7   :  { %1668 = vmatprep.subr.bf16.mxu1 %v3358_v33  ;;  %1864 = vmatprep.subr.bf16.mxu0 %v3359_v62  ;;  %v3368_v23 = vld [vmem:[#allocation129_spill] sm:$0xff]  ;;  %v3369_v33 = vld [vmem:[#allocation128_spill] sm:$0xff] }
  0xd8   :  { %v3370_v62 = vld [vmem:[#allocation81_spill] sm:$0xff] }
  0xda   :  { %1670 = vmatpush1.bf16.msra.mxu1 %v3360_v45  ;;  %1866 = vmatpush1.bf16.msra.mxu0 %v3361_v8  ;;  %v3371_v45 = vld [vmem:[#allocation82_spill] sm:$0xff]  ;;  %v3372_v8 = vld [vmem:[#allocation84_spill] sm:$0xff] }
  0xdb   :  { %1672 = vmatprep.subr.bf16.mxu1 %v3362_v15  ;;  %1868 = vmatprep.subr.bf16.mxu0 %v3363_v63  ;;  %v3379_v63 = vld [vmem:[#allocation20_spill] sm:$0xff] }
  0xde   :  { %1674 = vmatpush1.bf16.msra.mxu1 %v3364_v47  ;;  %1870 = vmatpush1.bf16.msra.mxu0 %v3365_v39  ;;  %v3382_v47 = vld [vmem:[#allocation23_spill] sm:$0xff]  ;;  %v3383_v39 = vld [vmem:[#allocation24_spill] sm:$0xff] }
  0xdf   :  { %1676 = vmatprep.subr.bf16.mxu1 %v3366_v10  ;;  %1872 = vmatprep.subr.bf16.mxu0 %v3367_v26  ;;  %v3384_v10 = vld [vmem:[#allocation25_spill] sm:$0xff] }
  0xe2   :  { %1678 = vmatpush1.bf16.msra.mxu1 %v3368_v23  ;;  %1874 = vmatpush1.bf16.msra.mxu0 %v3369_v33  ;;  %v3386_v23 = vld [vmem:[#allocation27_spill] sm:$0xff]  ;;  %v3387_v33 = vld [vmem:[#allocation28_spill] sm:$0xff] }
  0xe3   :  { %1680 = vmatprep.subr.bf16.mxu1 %v2706_v42  ;;  %1876 = vmatprep.subr.bf16.mxu0 %v3370_v62  ;;  %v3373_v42 = vld [vmem:[#allocation15_spill] sm:$0xff]  ;;  %v3388_v62 = vld [vmem:[#allocation29_spill] sm:$0xff] }
  0xe6   :  { %1682 = vmatpush1.bf16.msra.mxu1 %v2716_v46  ;;  %1878 = vmatpush1.bf16.msra.mxu0 %v3371_v45  ;;  %v3374_v46 = vld [vmem:[#allocation16_spill] sm:$0xff]  ;;  %v1703_v45 = vpack.c.bf16 %v3388_v62, %v3387_v33  ;;  %v3428_v62 = vld [vmem:[#allocation62_spill] sm:$0xff] }
  0xe7   :  { %1684 = vmatprep.subr.bf16.mxu1 %v2723_v19  ;;  %1880 = vmatprep.subr.bf16.mxu0 %v2725_v58  ;;  %v3375_v19 = vld [vmem:[#allocation17_spill] sm:$0xff]  ;;  %v3376_v58 = vld [vmem:[#allocation124_spill] sm:$0xff] }
  0xe8   :  { %v1695_v15 = vpack.c.bf16 %v3375_v19, %v3374_v46  ;;  %v3392_v46 = vpack.c.bf16 %v2226_v53, %v2224_v52  ;;  %v3393_v19 = vld [vmem:[#allocation32_spill] sm:$0xff]  ;;  %v3399_v52 = vld [vmem:[#allocation35_spill] sm:$0xff]  ;;  %v3400_v53 = vpack.c.bf16 %v2256_v20, %v2252_v13  ;;  %v3408_v20 = vpack.c.bf16 %v3315_v34, %v3242_v54  ;;  %v3421_v34 = vld [vmem:[#allocation54_spill] sm:$0xff] }
  0xe9   :  { %v3407_v13 = vld [vmem:[#allocation44_spill] sm:$0xff]  ;;  %v3420_v54 = vld [vmem:[#allocation55_spill] sm:$0xff] }
  0xea   :  { %1686 = vmatpush1.bf16.msra.mxu1 %v2738_v21  ;;  %1882 = vmatpush1.bf16.msra.mxu0 %v3372_v8  ;;  %v3377_v21 = vld [vmem:[#allocation19_spill] sm:$0xff]  ;;  %v3389_v8 = vld [vmem:[#allocation126_spill] sm:$0xff] }
  0xeb   :  { %1688 = vmatprep.subr.bf16.mxu1 %v2744_v17  ;;  %1884 = vmatprep.subr.bf16.mxu0 %v2746_v25  ;;  %v3378_v17 = vld [vmem:[#allocation18_spill] sm:$0xff] }
  0xec   :  { %v1697_v25 = vpack.c.bf16 %v3379_v63, %v3378_v17  ;;  %v3396_v17 = vpack.c.bf16 %v2242_v5, %v2240_v4  ;;  %v3397_v63 = vld [vmem:[#allocation34_spill] sm:$0xff]  ;;  %v3403_v4 = vld [vmem:[#allocation37_spill] sm:$0xff]  ;;  %v3404_v5 = vpack.c.bf16 %v2270_v49, %v2266_v36  ;;  %v3413_v49 = vld [vmem:[#allocation48_spill] sm:$0xff] }
  0xed   :  { %v3412_v36 = vld [vmem:[#allocation49_spill] sm:$0xff] }
  0xee   :  { %1690 = vmatpush1.bf16.msra.mxu1 %v2758_v61  ;;  %1886 = vmatpush1.bf16.msra.mxu0 %v2751_v31  ;;  %v3380_v61 = vld [vmem:[#allocation21_spill] sm:$0xff]  ;;  %v3381_v31 = vld [vmem:[#allocation22_spill] sm:$0xff] }
  0xef   :  { %1692 = vmatprep.subr.bf16.mxu1 %v2764_v60  ;;  %1888 = vmatprep.subr.bf16.mxu0 %v3373_v42  ;;  %v1699_v60 = vpack.c.bf16 %v3382_v47, %v3381_v31  ;;  %v3390_v42 = vld [vmem:[#allocation30_spill] sm:$0xff]  ;;  %v3414_v31 = vld [vmem:[#allocation47_spill] sm:$0xff] }
  0xf0   :  { %v3415_v47 = vpack.c.bf16 %v3413_v49, %v3414_v31 }
  0xf1   :  { %1368 = vmatmul.mubr.f32.vlgmr.msra.gmra.mrb[0].mxu0 %v3376_v58 }
  0xf2   :  { %1694 = vmatpush1.bf16.msra.mxu1 %v2772_v50  ;;  %1890 = vmatpush1.bf16.msra.mxu0 %v3377_v21  ;;  %v3385_v50 = vld [vmem:[#allocation26_spill] sm:$0xff]  ;;  %v3395_v21 = vld [vmem:[#allocation33_spill] sm:$0xff] }
  0xf3   :  { %1696 = vmatprep.subr.bf16.mxu1 %v1695_v15  ;;  %1892 = vmatprep.subr.bf16.mxu0 %v3380_v61  ;;  %v1701_v26 = vpack.c.bf16 %v3385_v50, %v3384_v10  ;;  %v3394_v15 = vpack.c.bf16 %v2234_v56, %v2230_v55  ;;  %v3401_v55 = vld [vmem:[#allocation36_spill] sm:$0xff]  ;;  %v3402_v56 = vpack.c.bf16 %v2264_v35, %v2258_v22  ;;  %v3409_v22 = vld [vmem:[#allocation46_spill] sm:$0xff]  ;;  %v3410_v35 = vld [vmem:[#allocation43_spill] sm:$0xff] }
  0xf4   :  { %1503 = vmatprep.mubr.f32.mxu0 %v2672_v2  ;;  %v3391_v2 = vld [vmem:[#allocation31_spill] sm:$0xff]  ;;  %v3411_v61 = vpack.c.bf16 %v3317_v40, %v3410_v35  ;;  %v3422_v10 = vld [vmem:[#allocation52_spill] sm:$0xff]  ;;  %v3424_v40 = vld [vmem:[#allocation58_spill] sm:$0xff] }
  0xf5   :  { %759 = vmatmul.mubr.f32.vlgmr.msra.gmra.mrb[0].mxu1 %v3376_v58  ;;  %v3423_v50 = vpack.c.bf16 %v3421_v34, %v3422_v10 }
  0xf6   :  { %1698 = vmatpush1.bf16.msra.mxu1 %v1697_v25  ;;  %1894 = vmatpush1.bf16.msra.mxu0 %v3383_v39  ;;  %v3398_v25 = vpack.c.bf16 %v2248_v11, %v2244_v6  ;;  %v3405_v6 = vld [vmem:[#allocation40_spill] sm:$0xff]  ;;  %v3406_v11 = vpack.c.bf16 %v3239_v59, %v3238_v27  ;;  %v3416_v27 = vld [vmem:[#allocation53_spill] sm:$0xff]  ;;  %v3417_v59 = vld [vmem:[#allocation51_spill] sm:$0xff] }
  0xf7   :  { %1700 = vmatprep.subr.bf16.mxu1 %v1699_v60  ;;  %1896 = vmatprep.subr.bf16.mxu0 %v3386_v23  ;;  %v3418_v60 = vld [vmem:[#allocation50_spill] sm:$0xff]  ;;  %v3426_v23 = vld [vmem:[#allocation56_spill] sm:$0xff] }
  0xf8   :  { %959 = vmatprep.mubr.f32.mxu1 %v3389_v8  ;;  %v3419_v39 = vpack.c.bf16 %v3417_v59, %v3418_v60  ;;  %v2101_v59 = vmov 1966171168  }
  0xf9   :  { %v1527_v60 = vunpack.c.l.s4 %v2101_v59 }
  0xfa   :  { %1702 = vmatpush1.bf16.msra.mxu1 %v1701_v26  ;;  %1898 = vmatpush1.bf16.msra.mxu0 %v3390_v42  ;;  %v3425_v26 = vld [vmem:[#allocation57_spill] sm:$0xff]  ;;  %v3431_v42 = vld [vmem:[#allocation64_spill] sm:$0xff] }
  0xfb   :  { %1704 = vmatprep.subr.bf16.mxu1 %v1703_v45  ;;  %1900 = vmatprep.subr.bf16.mxu0 %v3391_v2  ;;  %v3427_v33 = vpack.c.bf16 %v3425_v26, %v3426_v23  ;;  %v3429_v45 = vld [vmem:[#allocation59_spill] sm:$0xff]  ;;  %v3432_v2 = vpack.c.bf16 %v3328_v14, %v3327_v41  ;;  %v3439_v14 = vld [vmem:[#allocation76_spill] sm:$0xff]  ;;  %v3440_v41 = vpack.c.bf16 %v3338_v28, %v3337_v3  ;;  %v3449_v28 = vld [vmem:[#allocation85_spill] sm:$0xff] }
  0xfc   :  { %v3430_v8 = vpack.c.bf16 %v3326_v1, %v3429_v45  ;;  %v3437_v1 = vld [vmem:[#allocation73_spill] sm:$0xff]  ;;  %v3448_v3 = vld [vmem:[#allocation88_spill] sm:$0xff] }
  0xfe   :  { %1706 = vmatpush1.bf16.msra.mxu1 %v3392_v46  ;;  %1902 = vmatpush1.bf16.msra.mxu0 %v3393_v19  ;;  %v3433_v46 = vld [vmem:[#allocation68_spill] sm:$0xff]  ;;  %v3434_v19 = vpack.c.bf16 %v3332_v9, %v3331_v12  ;;  %v3441_v9 = vld [vmem:[#allocation79_spill] sm:$0xff]  ;;  %v3442_v12 = vpack.c.bf16 %v3339_v0, %v3294_v43  ;;  %v3452_v0 = vpack.c.bf16 %v3310_v30, %v2410_v44  ;;  %v204_v30 = vld [vmem:[%s3034_s5] sm:$0x3]  ;;  %s2102_s5 = smov [#allocation10]  }
  0xff   :  { %1708 = vmatprep.subr.bf16.mxu1 %v3394_v15  ;;  %1904 = vmatprep.subr.bf16.mxu0 %v3395_v21  ;;  %v3435_v15 = vld [vmem:[#allocation71_spill] sm:$0xff]  ;;  %v3436_v21 = vpack.c.bf16 %v3334_v51, %v3333_v38  ;;  %v3444_v51 = vld [vmem:[#allocation80_spill] sm:$0xff]  ;;  %s1548_s25 = sshll.u32 %s2102_s5, 4  ;;  %s1549_s25 = int_to_ptr.vmem [resolvable:$true] %s1548_s25 }
 0x100   :  { %v3443_v38 = vld [vmem:[#allocation83_spill] sm:$0xff]  ;;  %v3461_v44 = vld [vmem:[#allocation120_spill] sm:$0xff]  ;;  %s2065_s26 = scalar_lea.vmem %s1549_s25, 64  ;;  %p2070_p0 = scmp.lt.s32.totalorder %s1549_s25, %s1549_s25 }
 0x101   :  { %v3451_v43 = vld [vmem:[#allocation91_spill] sm:$0xff]  ;;  %p2066_p13 = scmp.ne.s32.totalorder %s1549_s25, %s2065_s26  ;;  %p2071_p1 = scmp.lt.s32.totalorder %s2065_s26, %s2065_s26 }
 0x102   :  { %1710 = vmatpush1.bf16.msra.mxu1 %v3396_v17  ;;  %1906 = vmatpush1.bf16.msra.mxu0 %v3397_v63  ;;  %v3438_v17 = vpack.c.bf16 %v3336_v48, %v3335_v7  ;;  %v3445_v63 = vpack.c.bf16 %v3303_v57, %v3444_v51  ;;  %v3446_v48 = vld [vmem:[#allocation86_spill] sm:$0xff]  ;;  %v3447_v7 = vpack.c.bf16 %v3306_v18, %v3305_v29  ;;  %v3457_v29 = vld [vmem:[#allocation127_spill] sm:$0xff] }
 0x103   :  { %1712 = vmatprep.subr.bf16.mxu1 %v3398_v25  ;;  %1908 = vmatprep.subr.bf16.mxu0 %v3399_v52  ;;  %v3450_v25 = vpack.c.bf16 %v3309_v24, %v3449_v28  ;;  %v3453_v57 = vld [vmem:[#allocation94_spill] sm:$0xff]  ;;  %v3456_v18 = vpack.c.bf16 %v2428_v37, %v3314_v32  ;;  %v3458_v24 = vlaneseq  ;;  %p2072_p2 = por %p2071_p1, %p2070_p0 }
 0x104   :  { %v3454_v52 = vld [vmem:[#allocation90_spill] sm:$0xff] }
 0x105   :  { %vm3000_vm0 = vcmp.lt.s32.totalorder %v3458_v24, 256  ;;  %p2073_p3 = pnand %p2072_p2, %p2066_p13 }
 0x106   :  { %1714 = vmatpush1.bf16.msra.mxu1 %v3400_v53  ;;  %1910 = vmatpush1.bf16.msra.mxu0 %v3401_v55  ;;  %v3455_v53 = vpack.c.bf16 %v3313_v16, %v3454_v52  ;;  %139 = vst.msk [vmem:[#allocation10] sm:$0x3] %vm3000_vm0, %v3461_v44 }
 0x107   :  { %1716 = vmatprep.subr.bf16.mxu1 %v3402_v56  ;;  %1912 = vmatprep.subr.bf16.mxu0 %v3403_v4  ;;  %v3462_v56 = vld [vmem:[#allocation95_spill] sm:$0xff] }
 0x108   :  { %v3463_v37 = vsub.s32 0, %v3462_v56  ;;  %v3464_v4 = vsub.s32 1, %v3462_v56 }
 0x10a   :  { %1718 = vmatpush1.bf16.msra.mxu1 %v3404_v5  ;;  %1914 = vmatpush1.bf16.msra.mxu0 %v3405_v6  ;;  %v220_v32 = vrot.slane %v204_v30, %v3463_v37  ;;  %v224_v5 = vrot.slane %v204_v30, %v3464_v4 }
 0x10b   :  { %1720 = vmatprep.subr.bf16.mxu1 %v3406_v11  ;;  %1916 = vmatprep.subr.bf16.mxu0 %v3407_v13 }
 0x10e   :  { %1722 = vmatpush1.bf16.msra.mxu1 %v3408_v20  ;;  %1918 = vmatpush1.bf16.msra.mxu0 %v3409_v22 }
 0x10f   :  { %1724 = vmatprep.subr.bf16.mxu1 %v3411_v61  ;;  %1920 = vmatprep.subr.bf16.mxu0 %v3412_v36 }
 0x112   :  { %1726 = vmatpush1.bf16.msra.mxu1 %v3415_v47  ;;  %1922 = vmatpush1.bf16.msra.mxu0 %v3416_v27 }
 0x113   :  { %1728 = vmatprep.subr.bf16.mxu1 %v3419_v39  ;;  %1924 = vmatprep.subr.bf16.mxu0 %v3420_v54  ;;  %v1528_v39 = vunpack.c.0.s8 %v1527_v60 }
 0x115   :  { %v1531_v34 = vsub.s32 %v1528_v39, %v3462_v56 }
 0x116   :  { %1730 = vmatpush1.bf16.msra.mxu1 %v3423_v50  ;;  %1926 = vmatpush1.bf16.msra.mxu0 %v3424_v40 }
 0x117   :  { %1732 = vmatprep.subr.bf16.mxu1 %v3427_v33  ;;  %1928 = vmatprep.subr.bf16.mxu0 %v3428_v62 }
 0x11a   :  { %1734 = vmatpush1.bf16.msra.mxu1 %v3430_v8  ;;  %1930 = vmatpush1.bf16.msra.mxu0 %v3431_v42 }
 0x11b   :  { %1736 = vmatprep.subr.bf16.mxu1 %v3432_v2  ;;  %1932 = vmatprep.subr.bf16.mxu0 %v3433_v46 }
 0x11e   :  { %1738 = vmatpush1.bf16.msra.mxu1 %v3434_v19  ;;  %1934 = vmatpush1.bf16.msra.mxu0 %v3435_v15 }
 0x11f   :  { %1740 = vmatprep.subr.bf16.mxu1 %v3436_v21  ;;  %1936 = vmatprep.subr.bf16.mxu0 %v3437_v1 }
 0x122   :  { %1742 = vmatpush1.bf16.msra.mxu1 %v3438_v17  ;;  %1938 = vmatpush1.bf16.msra.mxu0 %v3439_v14 }
 0x123   :  { %1744 = vmatprep.subr.bf16.mxu1 %v3440_v41  ;;  %1940 = vmatprep.subr.bf16.mxu0 %v3441_v9 }
 0x126   :  { %1746 = vmatpush1.bf16.msra.mxu1 %v3442_v12  ;;  %1942 = vmatpush1.bf16.msra.mxu0 %v3443_v38 }
 0x127   :  { %1748 = vmatprep.subr.bf16.mxu1 %v3445_v63  ;;  %1944 = vmatprep.subr.bf16.mxu0 %v3446_v48 }
 0x12a   :  { %1750 = vmatpush1.bf16.msra.mxu1 %v3447_v7  ;;  %1946 = vmatpush1.bf16.msra.mxu0 %v3448_v3 }
 0x12b   :  { %1752 = vmatprep.subr.bf16.mxu1 %v3450_v25  ;;  %1948 = vmatprep.subr.bf16.mxu0 %v3451_v43 }
 0x12e   :  { %1754 = vmatpush1.bf16.msra.mxu1 %v3452_v0  ;;  %1950 = vmatpush1.bf16.msra.mxu0 %v3453_v57 }
 0x12f   :  { %1756 = vmatprep.subr.bf16.mxu1 %v3455_v53 }
 0x131   :  { %1505 = vmatmul.mubr.f32.vlgmr.msra.gmra.mrb[0].mxu0 %v3376_v58 }
 0x132   :  { %1758 = vmatpush1.bf16.msra.mxu1 %v3456_v18 }
 0x135   :  { %962 = vmatmul.mubr.f32.vlgmr.msra.gmra.mrb[0].mxu1 %v3457_v29 }
 0x204   :  { %v1506_v16 = vpop.f32.mrb[0].mxu0 }
 0x205   :  { %v1508_v58 = vpop.f32.mrb[1].mxu0 }
 0x208   :  { %v963_v6 = vpop.f32.mrb[0].mxu1 }
 0x209   :  { %v1951_v11 = vadd.f32 %v963_v6, %v220_v32  ;;  %v965_v13 = vpop.f32.mrb[1].mxu1 }
 0x20a   :  { %v1953_v20 = vadd.f32 %v965_v13, %v224_v5 }
 0x20b   :  { %v1952_v22 = vadd.f32 %v1951_v11, %v1506_v16 }
 0x20c   :  { %v1954_v35 = vadd.f32 %v1953_v20, %v1508_v58 }
 0x20d   :  { %v1565_v61 = vmul.f32 -1.442695, %v1952_v22 }
 0x20e   :  { %v1566_v36 = vmul.f32 -1.442695, %v1954_v35 }
 0x20f   :  { %1981 = vpow2.f32 %v1565_v61 }
 0x210   :  { %1983 = vpow2.f32 %v1566_v36 }
 0x219   :  { %v1982_v49 = vpop.eup %1981 }
 0x21a   :  { %v1984_v31 = vpop.eup %1983  ;;  %v1517_v47 = vadd.f32 1.0, %v1982_v49 }
 0x21b   :  { %v1518_v27 = vadd.f32 1.0, %v1984_v31 }
 0x21c   :  { %1985 = vrcp.f32 %v1517_v47 }
 0x21d   :  { %1987 = vrcp.f32 %v1518_v27 }
 0x226   :  { %v1986_v54 = vpop.eup %1985 }
 0x227   :  { %v1988_v10 = vpop.eup %1987 }
 0x228   :  { %v1525_v50 = vcombine.low %v1986_v54, %v1988_v10 }
 0x22a   :  { %v1532_v40 = vrot.slane %v1525_v50, %v1531_v34 }
 0x22c   :  { %v1539_v26 = vrot.slane %v1532_v40, %v1531_v34 }
 0x22e   :  { %1541 = vst.msk [vmem:[#allocation10 + $0x2] sm:$0x3] %vm3000_vm0, %v1539_v26 }
 0x22f   :  { %2076 = shalt.err (!%p2073_p3)
}
 0x230   :  { %s2077_s0 = scalar_lea.hbm %s3035_s6, 64 }
 0x231   :  { %p2078_p4 = scmp.ne.s32.totalorder %s3035_s6, %s2077_s0  ;;  %p2081_p5 = scmp.lt.u32.totalorder %s2077_s0, %s3035_s6 }
 0x233   :  { %p2083_p6 = pnand %p2081_p5, %p2078_p4 }
 0x235   :  { %2086 = shalt.err (!%p2083_p6)
}
 0x236   :  { %1551 = dma.vmem_to_hbm [thread:$0]  %s1549_s25, 64, %s3035_s6, [#allocation4]  }
 0x237   :  { %2093 = dma.done.wait [#allocation4], 64  }
 0x238   :  { %2094 = vsyncadd [#allocation4], 4294967232 }
 0x239   :  { %1555 = vsyncpa [#allocation3], 1 }
 0x23a   :  { %1556 = vsyncpa [#allocation8], 1 }
 0x23b   :  { %1557 = vsyncpa [#allocation4], 1 }
 0x23c   :  { %1558 = vsyncpa [#allocation5], 1 }

</bundles_post_ra>
